<compile_context>
chip_gen: v7x
topology: tpu7x:2x2x1
jax: 0.10.0
libtpu: 0.0.40
codegen_flags: <defaults>
</compile_context>

<pallas_src>
import jax
import jax.numpy as jnp
from jax.experimental import pallas as pl
from jax.experimental.pallas import tpu as pltpu

EPS = 1e-5
COUT_PAD = 128   # lane-dense channel width used for every layer


def cnn_kernel(x_ref, w1_ref, sh1_ref, w2_ref, sh2_ref, w3_ref, sh3_ref,
               pooled_ref, xp_ref, h1p_ref, h2p_ref):
    """One batch-block of the full CNN forward.

    x_ref      : (bB, L, 20)   input tile (f32)
    w*_ref     : (Cin, 3*128)  folded conv weights, taps along N (compute dtype)
    sh*_ref    : (1, 128)      folded bias/BN shift (f32)
    pooled_ref : (bB, 128)     AdaptiveAvgPool1d(1) output (f32)
    *p_ref     : (bB, Lp, C)   zero-halo padded activation scratch (f32)
    """
    bB, L, _ = x_ref.shape
    Lp = xp_ref.shape[1]

    def zero_halo(ref):
        # Only halo + alignment-tail rows are zeroed, never the full buffer.
        # Re-done every grid step => order/core independent (parallel-safe).
        c = ref.shape[-1]
        ref[:, 0:1, :] = jnp.zeros((bB, 1, c), ref.dtype)
        ref[:, L + 1:, :] = jnp.zeros((bB, Lp - L - 1, c), ref.dtype)

    zero_halo(xp_ref)
    zero_halo(h1p_ref)
    zero_halo(h2p_ref)

    # Stage the input tile into the interior of its padded buffer.
    xp_ref[:, 1:L + 1, :] = x_ref[...]

    def conv3(pad_ref, w_ref, sh_ref, relu):
        # k=3 / pad=1 Conv1d as ONE MXU matmul:
        #   yw = Xpad @ [W0 | W1 | W2]         (taps along N, 128-aligned blocks)
        #   y[l] = yw[l+0, :C] + yw[l+1, C:2C] + yw[l+2, 2C:3C]
        cin = pad_ref.shape[-1]
        cout = w_ref.shape[-1] // 3
        lhs = pad_ref[...].reshape(bB * Lp, cin).astype(w_ref.dtype)
        yw = jnp.dot(lhs, w_ref[...], preferred_element_type=jnp.float32)
        yw = yw.reshape(bB, Lp, 3 * cout)
        y = (yw[:, 0:L, 0:cout]
             + yw[:, 1:L + 1, cout:2 * cout]
             + yw[:, 2:L + 2, 2 * cout:3 * cout])
        y = y + sh_ref[...]                      # f32 epilogue (bias + BN folded)
        if relu:
            y = jnp.maximum(y, 0.0)
        return y                                 # (bB, L, cout) f32

    h1 = conv3(xp_ref, w1_ref, sh1_ref, relu=True)     # conv1 + BN1 + ReLU
    h1p_ref[:, 1:L + 1, :] = h1
    h2 = conv3(h1p_ref, w2_ref, sh2_ref, relu=True)    # conv2 + BN2 + ReLU
    h2p_ref[:, 1:L + 1, :] = h2
    h3 = conv3(h2p_ref, w3_ref, sh3_ref, relu=False)   # conv3
    pooled_ref[...] = jnp.mean(h3, axis=1)             # AdaptiveAvgPool1d(1)


def cnn_forward(x, kp, *, block_b=8):
    """Full CNN.forward.  x: (B, L, 20) f32 -> (B, 1) f32.

    block_b sizes the per-grid-step VMEM residency (~block_b*Lp*(20+2*128)*4 B
    of scratch + the 3x-wide matmul output); block_b=8 keeps it a few MiB even
    for CREMA-D-scale L, comfortably under v7x's 64 MiB VMEM.
    """
    B, L, cin = x.shape
    bb = min(block_b, B)
    Bp = -(-B // bb) * bb
    if Bp != B:                                  # pad batch to a block multiple
        x = jnp.pad(x, ((0, Bp - B), (0, 0), (0, 0)))
    Lp = ((L + 2 + 7) // 8) * 8                  # 8-aligned rows -> free reshapes

    def full(arr):                               # grid-resident (non-tiled) operand
        return pl.BlockSpec(arr.shape, lambda i: (0,) * arr.ndim)

    pooled = pl.pallas_call(
        cnn_kernel,
        out_shape=jax.ShapeDtypeStruct((Bp, COUT_PAD), jnp.float32),
        grid=(Bp // bb,),
        in_specs=[
            pl.BlockSpec((bb, L, cin), lambda i: (i, 0, 0)),
            full(kp["w1"]), full(kp["sh1"]),
            full(kp["w2"]), full(kp["sh2"]),
            full(kp["w3"]), full(kp["sh3"]),
        ],
        out_specs=pl.BlockSpec((bb, COUT_PAD), lambda i: (i, 0)),
        scratch_shapes=[
            pltpu.VMEM((bb, Lp, cin), jnp.float32),
            pltpu.VMEM((bb, Lp, COUT_PAD), jnp.float32),
            pltpu.VMEM((bb, Lp, COUT_PAD), jnp.float32),
        ],
        compiler_params=pltpu.CompilerParams(
            dimension_semantics=("parallel",)),    # v7x: 2 TCs split the batch
    )(x, kp["w1"], kp["sh1"], kp["w2"], kp["sh2"], kp["w3"], kp["sh3"])

    # Lane-dense (B, 128) kernel output; the tiny 128->1 head runs outside.
    return pooled[:B] @ kp["fcw"] + kp["fcb"]


def init_params(key):
    """Raw parameters in PyTorch layouts (Conv1d: (Cout, Cin, k), Linear: (out, in))."""
    ks = jax.random.split(key, 8)

    def nrm(k, shape, scale=0.1):
        return scale * jax.random.normal(k, shape, dtype=jnp.float32)

    def bn_stats(c):
        return (jnp.linspace(0.8, 1.2, c, dtype=jnp.float32),     # gamma
                jnp.linspace(-0.1, 0.1, c, dtype=jnp.float32),    # beta
                jnp.linspace(-0.05, 0.05, c, dtype=jnp.float32),  # running mean
                jnp.linspace(0.9, 1.1, c, dtype=jnp.float32))     # running var

    return dict(
        w1=nrm(ks[0], (64, 20, 3)),   b1=nrm(ks[1], (64,)),   bn1=bn_stats(64),
        w2=nrm(ks[2], (128, 64, 3)),  b2=nrm(ks[3], (128,)),  bn2=bn_stats(128),
        w3=nrm(ks[4], (128, 128, 3)), b3=nrm(ks[5], (128,)),
        fcw=nrm(ks[6], (1, 128)),     fcb=nrm(ks[7], (1,)),
    )


def fold_params(raw, compute_dtype):
    """Fold bias + eval-mode BN into the conv weights; lay the 3 taps out along N
    (128-aligned blocks) and pad channels so every layer is lane-dense."""

    def fold_conv(w_oik, b, bn=None, cin_pad=None):
        cout, cin, _ = w_oik.shape
        if bn is not None:
            gamma, beta, mean, var = bn
            inv = gamma / jnp.sqrt(var + EPS)
            w_oik = w_oik * inv[:, None, None]
            shift = beta + (b - mean) * inv
        else:
            shift = b
        w = jnp.transpose(w_oik, (1, 2, 0))                # (cin, k, cout)
        if COUT_PAD > cout:                                # lane-dense outputs
            w = jnp.pad(w, ((0, 0), (0, 0), (0, COUT_PAD - cout)))
            shift = jnp.pad(shift, (0, COUT_PAD - cout))
        w_wide = w.reshape(cin, 3 * COUT_PAD)              # taps along N
        if cin_pad is not None and cin_pad > cin:          # lane-dense inputs
            w_wide = jnp.pad(w_wide, ((0, cin_pad - cin), (0, 0)))
        return (w_wide.astype(compute_dtype),
                shift.reshape(1, -1).astype(jnp.float32))

    w1, sh1 = fold_conv(raw["w1"], raw["b1"], raw["bn1"])
    w2, sh2 = fold_conv(raw["w2"], raw["b2"], raw["bn2"], cin_pad=COUT_PAD)
    w3, sh3 = fold_conv(raw["w3"], raw["b3"])
    return dict(w1=w1, sh1=sh1, w2=w2, sh2=sh2, w3=w3, sh3=sh3,
                fcw=raw["fcw"].T.astype(jnp.float32),
                fcb=raw["fcb"].astype(jnp.float32))


def reference(x, raw):
    """Pure-JAX reference matching PyTorch semantics (eval-mode BatchNorm)."""
    h = jnp.transpose(x, (0, 2, 1))                        # NLC -> NCL (module permute)

    def conv(h, w, b):
        y = jax.lax.conv_general_dilated(
            h, w, window_strides=(1,), padding=[(1, 1)],
            dimension_numbers=("NCH", "OIH", "NCH"))
        return y + b.reshape(1, -1, 1)

    def bn(h, p):
        gamma, beta, mean, var = p
        inv = gamma / jnp.sqrt(var + EPS)
        return h * inv.reshape(1, -1, 1) + (beta - mean * inv).reshape(1, -1, 1)

    h = jnp.maximum(bn(conv(h, raw["w1"], raw["b1"]), raw["bn1"]), 0.0)
    h = jnp.maximum(bn(conv(h, raw["w2"], raw["b2"]), raw["bn2"]), 0.0)
    h = conv(h, raw["w3"], raw["b3"])
    pooled = jnp.mean(h, axis=-1)                          # AdaptiveAvgPool1d(1) + squeeze
    return pooled @ raw["fcw"].T + raw["fcb"]              # fc1 -> (B, 1)


if __name__ == "__main__":
    key = jax.random.PRNGKey(0)
    kx, kp_key = jax.random.split(key)
    B, L, C = 16, 16, 20                                   # x: (batch, frames, 20 feats)
    x = jax.random.normal(kx, (B, L, C), dtype=jnp.float32)
    raw = init_params(kp_key)
    ref = jax.block_until_ready(reference(x, raw))

    # f32 MXU path: tight check against the PyTorch-semantics reference.
    out_f32 = jax.block_until_ready(
        cnn_forward(x, fold_params(raw, jnp.float32), block_b=8))
    assert out_f32.shape == (B, 1), out_f32.shape
    assert jnp.allclose(out_f32, ref, rtol=1e-2, atol=1e-2), (out_f32, ref)

    # bf16 weights/LHS (v6e/v7x MXU-friendly), f32 accumulation + f32 epilogue.
    out_bf16 = jax.block_until_ready(
        cnn_forward(x, fold_params(raw, jnp.bfloat16), block_b=8))
    assert out_bf16.shape == (B, 1), out_bf16.shape
    assert jnp.allclose(out_bf16, ref, rtol=5e-2, atol=5e-2), (out_bf16, ref)

    print("KERNEL_OK")
</pallas_src>

<mosaic_0001>
module attributes {stable_mosaic.version = 11 : i64} {
  func.func @cnn_kernel(%arg0: i32, %arg1: memref<8x16x20xf32, #tpu.memory_space<vmem>>, %arg2: memref<20x384xf32, #tpu.memory_space<vmem>>, %arg3: memref<1x128xf32, #tpu.memory_space<vmem>>, %arg4: memref<128x384xf32, #tpu.memory_space<vmem>>, %arg5: memref<1x128xf32, #tpu.memory_space<vmem>>, %arg6: memref<128x384xf32, #tpu.memory_space<vmem>>, %arg7: memref<1x128xf32, #tpu.memory_space<vmem>>, %arg8: memref<8x128xf32, #tpu.memory_space<vmem>>, %arg9: memref<8x24x20xf32, #tpu.memory_space<vmem>>, %arg10: memref<8x24x128xf32, #tpu.memory_space<vmem>>, %arg11: memref<8x24x128xf32, #tpu.memory_space<vmem>>) attributes {dimension_semantics = [#tpu.dimension_semantics<parallel>], iteration_bounds = array<i64: 2>, scalar_prefetch = 0 : i64, scratch_operands = 3 : i64, tpu.core_type = #tpu.core_type<tc>, window_params = [{transform_indices = @transform_0, window_bounds = array<i64: 8, 16, 20>}, {pipeline_mode = #tpu.pipeline_mode<synchronous>, transform_indices = @transform_1, window_bounds = array<i64: 20, 384>}, {pipeline_mode = #tpu.pipeline_mode<synchronous>, transform_indices = @transform_2, window_bounds = array<i64: 1, 128>}, {pipeline_mode = #tpu.pipeline_mode<synchronous>, transform_indices = @transform_3, window_bounds = array<i64: 128, 384>}, {pipeline_mode = #tpu.pipeline_mode<synchronous>, transform_indices = @transform_4, window_bounds = array<i64: 1, 128>}, {pipeline_mode = #tpu.pipeline_mode<synchronous>, transform_indices = @transform_5, window_bounds = array<i64: 128, 384>}, {pipeline_mode = #tpu.pipeline_mode<synchronous>, transform_indices = @transform_6, window_bounds = array<i64: 1, 128>}, {transform_indices = @transform_7, window_bounds = array<i64: 8, 128>}]} {
    %cst = arith.constant 0.000000e+00 : f32
    %0 = vector.broadcast %cst : f32 to vector<8x1x20xf32>
    %c0 = arith.constant 0 : index
    %c0_0 = arith.constant 0 : index
    %c0_1 = arith.constant 0 : index
    %1 = vector.load %arg9[%c0, %c0_0, %c0_1] : memref<8x24x20xf32, #tpu.memory_space<vmem>>, vector<8x1x20xf32>
    tpu.vector_store %arg9[%c0, %c0_0, %c0_1], %0 {strides = array<i32>} : memref<8x24x20xf32, #tpu.memory_space<vmem>>, vector<8x1x20xf32>,
    %cst_2 = arith.constant 0.000000e+00 : f32
    %2 = vector.broadcast %cst_2 : f32 to vector<8x7x20xf32>
    %c0_3 = arith.constant 0 : index
    %c17 = arith.constant 17 : index
    %c0_4 = arith.constant 0 : index
    %3 = vector.load %arg9[%c0_3, %c17, %c0_4] : memref<8x24x20xf32, #tpu.memory_space<vmem>>, vector<8x7x20xf32>
    tpu.vector_store %arg9[%c0_3, %c17, %c0_4], %2 {strides = array<i32>} : memref<8x24x20xf32, #tpu.memory_space<vmem>>, vector<8x7x20xf32>,
    %cst_5 = arith.constant 0.000000e+00 : f32
    %4 = vector.broadcast %cst_5 : f32 to vector<8x1x128xf32>
    %c0_6 = arith.constant 0 : index
    %c0_7 = arith.constant 0 : index
    %c0_8 = arith.constant 0 : index
    %5 = vector.load %arg10[%c0_6, %c0_7, %c0_8] : memref<8x24x128xf32, #tpu.memory_space<vmem>>, vector<8x1x128xf32>
    tpu.vector_store %arg10[%c0_6, %c0_7, %c0_8], %4 {strides = array<i32>} : memref<8x24x128xf32, #tpu.memory_space<vmem>>, vector<8x1x128xf32>,
    %cst_9 = arith.constant 0.000000e+00 : f32
    %6 = vector.broadcast %cst_9 : f32 to vector<8x7x128xf32>
    %c0_10 = arith.constant 0 : index
    %c17_11 = arith.constant 17 : index
    %c0_12 = arith.constant 0 : index
    %7 = vector.load %arg10[%c0_10, %c17_11, %c0_12] : memref<8x24x128xf32, #tpu.memory_space<vmem>>, vector<8x7x128xf32>
    tpu.vector_store %arg10[%c0_10, %c17_11, %c0_12], %6 {strides = array<i32>} : memref<8x24x128xf32, #tpu.memory_space<vmem>>, vector<8x7x128xf32>,
    %cst_13 = arith.constant 0.000000e+00 : f32
    %8 = vector.broadcast %cst_13 : f32 to vector<8x1x128xf32>
    %c0_14 = arith.constant 0 : index
    %c0_15 = arith.constant 0 : index
    %c0_16 = arith.constant 0 : index
    %9 = vector.load %arg11[%c0_14, %c0_15, %c0_16] : memref<8x24x128xf32, #tpu.memory_space<vmem>>, vector<8x1x128xf32>
    tpu.vector_store %arg11[%c0_14, %c0_15, %c0_16], %8 {strides = array<i32>} : memref<8x24x128xf32, #tpu.memory_space<vmem>>, vector<8x1x128xf32>,
    %cst_17 = arith.constant 0.000000e+00 : f32
    %10 = vector.broadcast %cst_17 : f32 to vector<8x7x128xf32>
    %c0_18 = arith.constant 0 : index
    %c17_19 = arith.constant 17 : index
    %c0_20 = arith.constant 0 : index
    %11 = vector.load %arg11[%c0_18, %c17_19, %c0_20] : memref<8x24x128xf32, #tpu.memory_space<vmem>>, vector<8x7x128xf32>
    tpu.vector_store %arg11[%c0_18, %c17_19, %c0_20], %10 {strides = array<i32>} : memref<8x24x128xf32, #tpu.memory_space<vmem>>, vector<8x7x128xf32>,
    %c0_21 = arith.constant 0 : index
    %c0_22 = arith.constant 0 : index
    %c0_23 = arith.constant 0 : index
    %12 = vector.load %arg1[%c0_21, %c0_22, %c0_23] : memref<8x16x20xf32, #tpu.memory_space<vmem>>, vector<8x16x20xf32>
    %c0_24 = arith.constant 0 : index
    %c1 = arith.constant 1 : index
    %c0_25 = arith.constant 0 : index
    %13 = vector.load %arg9[%c0_24, %c1, %c0_25] : memref<8x24x20xf32, #tpu.memory_space<vmem>>, vector<8x16x20xf32>
    tpu.vector_store %arg9[%c0_24, %c1, %c0_25], %12 {strides = array<i32>} : memref<8x24x20xf32, #tpu.memory_space<vmem>>, vector<8x16x20xf32>,
    %c0_26 = arith.constant 0 : index
    %c0_27 = arith.constant 0 : index
    %c0_28 = arith.constant 0 : index
    %14 = vector.load %arg9[%c0_26, %c0_27, %c0_28] : memref<8x24x20xf32, #tpu.memory_space<vmem>>, vector<8x24x20xf32>
    %15 = vector.shape_cast %14 : vector<8x24x20xf32> to vector<192x20xf32>
    %c0_29 = arith.constant 0 : index
    %c0_30 = arith.constant 0 : index
    %16 = vector.load %arg2[%c0_29, %c0_30] : memref<20x384xf32, #tpu.memory_space<vmem>>, vector<20x384xf32>
    %cst_31 = arith.constant dense<0.000000e+00> : vector<192x384xf32>
    %17 = tpu.matmul %15, %16, %cst_31 {dimension_numbers = #tpu.dot_dimension_numbers<[1], [0], [0], [1], [0, 0, 1, 1], [], []>} : vector<192x20xf32>, vector<20x384xf32>, vector<192x384xf32> -> vector<192x384xf32>
    %18 = vector.shape_cast %17 : vector<192x384xf32> to vector<8x24x384xf32>
    %19 = vector.extract_strided_slice %18 {offsets = [0, 0, 0], sizes = [8, 16, 128], strides = [1, 1, 1]} : vector<8x24x384xf32> to vector<8x16x128xf32>
    %20 = vector.extract_strided_slice %18 {offsets = [0, 1, 128], sizes = [8, 16, 128], strides = [1, 1, 1]} : vector<8x24x384xf32> to vector<8x16x128xf32>
    %21 = arith.addf %19, %20 : vector<8x16x128xf32>
    %22 = vector.extract_strided_slice %18 {offsets = [0, 2, 256], sizes = [8, 16, 128], strides = [1, 1, 1]} : vector<8x24x384xf32> to vector<8x16x128xf32>
    %23 = arith.addf %21, %22 : vector<8x16x128xf32>
    %c0_32 = arith.constant 0 : index
    %c0_33 = arith.constant 0 : index
    %24 = vector.load %arg3[%c0_32, %c0_33] : memref<1x128xf32, #tpu.memory_space<vmem>>, vector<1x128xf32>
    %25 = vector.shape_cast %24 : vector<1x128xf32> to vector<1x1x128xf32>
    %26 = vector.broadcast %25 : vector<1x1x128xf32> to vector<8x16x128xf32>
    %27 = arith.addf %23, %26 : vector<8x16x128xf32>
    %cst_34 = arith.constant 0.000000e+00 : f32
    %28 = vector.broadcast %cst_34 : f32 to vector<8x16x128xf32>
    %29 = arith.maximumf %27, %28 : vector<8x16x128xf32>
    %c0_35 = arith.constant 0 : index
    %c1_36 = arith.constant 1 : index
    %c0_37 = arith.constant 0 : index
    %30 = vector.load %arg10[%c0_35, %c1_36, %c0_37] : memref<8x24x128xf32, #tpu.memory_space<vmem>>, vector<8x16x128xf32>
    tpu.vector_store %arg10[%c0_35, %c1_36, %c0_37], %29 {strides = array<i32>} : memref<8x24x128xf32, #tpu.memory_space<vmem>>, vector<8x16x128xf32>,
    %c0_38 = arith.constant 0 : index
    %c0_39 = arith.constant 0 : index
    %c0_40 = arith.constant 0 : index
    %31 = vector.load %arg10[%c0_38, %c0_39, %c0_40] : memref<8x24x128xf32, #tpu.memory_space<vmem>>, vector<8x24x128xf32>
    %32 = vector.shape_cast %31 : vector<8x24x128xf32> to vector<192x128xf32>
    %c0_41 = arith.constant 0 : index
    %c0_42 = arith.constant 0 : index
    %33 = vector.load %arg4[%c0_41, %c0_42] : memref<128x384xf32, #tpu.memory_space<vmem>>, vector<128x384xf32>
    %cst_43 = arith.constant dense<0.000000e+00> : vector<192x384xf32>
    %34 = tpu.matmul %32, %33, %cst_43 {dimension_numbers = #tpu.dot_dimension_numbers<[1], [0], [0], [1], [0, 0, 1, 1], [], []>} : vector<192x128xf32>, vector<128x384xf32>, vector<192x384xf32> -> vector<192x384xf32>
    %35 = vector.shape_cast %34 : vector<192x384xf32> to vector<8x24x384xf32>
    %36 = vector.extract_strided_slice %35 {offsets = [0, 0, 0], sizes = [8, 16, 128], strides = [1, 1, 1]} : vector<8x24x384xf32> to vector<8x16x128xf32>
    %37 = vector.extract_strided_slice %35 {offsets = [0, 1, 128], sizes = [8, 16, 128], strides = [1, 1, 1]} : vector<8x24x384xf32> to vector<8x16x128xf32>
    %38 = arith.addf %36, %37 : vector<8x16x128xf32>
    %39 = vector.extract_strided_slice %35 {offsets = [0, 2, 256], sizes = [8, 16, 128], strides = [1, 1, 1]} : vector<8x24x384xf32> to vector<8x16x128xf32>
    %40 = arith.addf %38, %39 : vector<8x16x128xf32>
    %c0_44 = arith.constant 0 : index
    %c0_45 = arith.constant 0 : index
    %41 = vector.load %arg5[%c0_44, %c0_45] : memref<1x128xf32, #tpu.memory_space<vmem>>, vector<1x128xf32>
    %42 = vector.shape_cast %41 : vector<1x128xf32> to vector<1x1x128xf32>
    %43 = vector.broadcast %42 : vector<1x1x128xf32> to vector<8x16x128xf32>
    %44 = arith.addf %40, %43 : vector<8x16x128xf32>
    %cst_46 = arith.constant 0.000000e+00 : f32
    %45 = vector.broadcast %cst_46 : f32 to vector<8x16x128xf32>
    %46 = arith.maximumf %44, %45 : vector<8x16x128xf32>
    %c0_47 = arith.constant 0 : index
    %c1_48 = arith.constant 1 : index
    %c0_49 = arith.constant 0 : index
    %47 = vector.load %arg11[%c0_47, %c1_48, %c0_49] : memref<8x24x128xf32, #tpu.memory_space<vmem>>, vector<8x16x128xf32>
    tpu.vector_store %arg11[%c0_47, %c1_48, %c0_49], %46 {strides = array<i32>} : memref<8x24x128xf32, #tpu.memory_space<vmem>>, vector<8x16x128xf32>,
    %c0_50 = arith.constant 0 : index
    %c0_51 = arith.constant 0 : index
    %c0_52 = arith.constant 0 : index
    %48 = vector.load %arg11[%c0_50, %c0_51, %c0_52] : memref<8x24x128xf32, #tpu.memory_space<vmem>>, vector<8x24x128xf32>
    %49 = vector.shape_cast %48 : vector<8x24x128xf32> to vector<192x128xf32>
    %c0_53 = arith.constant 0 : index
    %c0_54 = arith.constant 0 : index
    %50 = vector.load %arg6[%c0_53, %c0_54] : memref<128x384xf32, #tpu.memory_space<vmem>>, vector<128x384xf32>
    %cst_55 = arith.constant dense<0.000000e+00> : vector<192x384xf32>
    %51 = tpu.matmul %49, %50, %cst_55 {dimension_numbers = #tpu.dot_dimension_numbers<[1], [0], [0], [1], [0, 0, 1, 1], [], []>} : vector<192x128xf32>, vector<128x384xf32>, vector<192x384xf32> -> vector<192x384xf32>
    %52 = vector.shape_cast %51 : vector<192x384xf32> to vector<8x24x384xf32>
    %53 = vector.extract_strided_slice %52 {offsets = [0, 0, 0], sizes = [8, 16, 128], strides = [1, 1, 1]} : vector<8x24x384xf32> to vector<8x16x128xf32>
    %54 = vector.extract_strided_slice %52 {offsets = [0, 1, 128], sizes = [8, 16, 128], strides = [1, 1, 1]} : vector<8x24x384xf32> to vector<8x16x128xf32>
    %55 = arith.addf %53, %54 : vector<8x16x128xf32>
    %56 = vector.extract_strided_slice %52 {offsets = [0, 2, 256], sizes = [8, 16, 128], strides = [1, 1, 1]} : vector<8x24x384xf32> to vector<8x16x128xf32>
    %57 = arith.addf %55, %56 : vector<8x16x128xf32>
    %c0_56 = arith.constant 0 : index
    %c0_57 = arith.constant 0 : index
    %58 = vector.load %arg7[%c0_56, %c0_57] : memref<1x128xf32, #tpu.memory_space<vmem>>, vector<1x128xf32>
    %59 = vector.shape_cast %58 : vector<1x128xf32> to vector<1x1x128xf32>
    %60 = vector.broadcast %59 : vector<1x1x128xf32> to vector<8x16x128xf32>
    %61 = arith.addf %57, %60 : vector<8x16x128xf32>
    %cst_58 = arith.constant dense<0.000000e+00> : vector<8x128xf32>
    %62 = vector.multi_reduction <add>, %61, %cst_58 [1] : vector<8x16x128xf32> to vector<8x128xf32>
    %cst_59 = arith.constant 1.600000e+01 : f32
    %63 = vector.broadcast %cst_59 : f32 to vector<8x128xf32>
    %64 = arith.divf %62, %63 : vector<8x128xf32>
    %c0_60 = arith.constant 0 : index
    %c0_61 = arith.constant 0 : index
    %65 = vector.load %arg8[%c0_60, %c0_61] : memref<8x128xf32, #tpu.memory_space<vmem>>, vector<8x128xf32>
    tpu.vector_store %arg8[%c0_60, %c0_61], %64 {strides = array<i32>} : memref<8x128xf32, #tpu.memory_space<vmem>>, vector<8x128xf32>,
    return
  }
  func.func @transform_0(%arg0: i32) -> (i32, i32, i32) {
    %c0_i32 = arith.constant 0 : i32
    %c0_i32_0 = arith.constant 0 : i32
    %c0_i32_1 = arith.constant 0 : i32
    return %arg0, %c0_i32, %c0_i32_0 : i32, i32, i32
  }
  func.func @transform_1(%arg0: i32) -> (i32, i32) {
    %c0_i32 = arith.constant 0 : i32
    %c0_i32_0 = arith.constant 0 : i32
    %c0_i32_1 = arith.constant 0 : i32
    return %c0_i32, %c0_i32_0 : i32, i32
  }
  func.func @transform_2(%arg0: i32) -> (i32, i32) {
    %c0_i32 = arith.constant 0 : i32
    %c0_i32_0 = arith.constant 0 : i32
    %c0_i32_1 = arith.constant 0 : i32
    return %c0_i32, %c0_i32_0 : i32, i32
  }
  func.func @transform_3(%arg0: i32) -> (i32, i32) {
    %c0_i32 = arith.constant 0 : i32
    %c0_i32_0 = arith.constant 0 : i32
    %c0_i32_1 = arith.constant 0 : i32
    return %c0_i32, %c0_i32_0 : i32, i32
  }
  func.func @transform_4(%arg0: i32) -> (i32, i32) {
    %c0_i32 = arith.constant 0 : i32
    %c0_i32_0 = arith.constant 0 : i32
    %c0_i32_1 = arith.constant 0 : i32
    return %c0_i32, %c0_i32_0 : i32, i32
  }
  func.func @transform_5(%arg0: i32) -> (i32, i32) {
    %c0_i32 = arith.constant 0 : i32
    %c0_i32_0 = arith.constant 0 : i32
    %c0_i32_1 = arith.constant 0 : i32
    return %c0_i32, %c0_i32_0 : i32, i32
  }
  func.func @transform_6(%arg0: i32) -> (i32, i32) {
    %c0_i32 = arith.constant 0 : i32
    %c0_i32_0 = arith.constant 0 : i32
    %c0_i32_1 = arith.constant 0 : i32
    return %c0_i32, %c0_i32_0 : i32, i32
  }
  func.func @transform_7(%arg0: i32) -> (i32, i32) {
    %c0_i32 = arith.constant 0 : i32
    %c0_i32_0 = arith.constant 0 : i32
    return %arg0, %c0_i32 : i32, i32
  }
}

</mosaic_0001>

<bundles_post_ra>
// kernel: tpu_custom_call.1
= control target key start
LH: loop header
LB: loop body
LE: loop exit
PB: predicated region body
PF: predicated region fallthrough
CT: control target
= control target key end

     0   :  { %12 = vsyncpa [#allocation6], 0  ;;  %s4318_s0 = inlined_call_operand.hbm [shape: f32[16,16,20], index: 0, kind: input, shape index: {}]   ;;  %s4319_s1 = inlined_call_operand.hbm [shape: f32[20,384], index: 1, kind: input, shape index: {}]   ;;  %s4320_s2 = inlined_call_operand.vmem [shape: f32[1,128], index: 2, kind: input, shape index: {}]   ;;  %s4321_s3 = inlined_call_operand.hbm [shape: f32[128,384], index: 3, kind: input, shape index: {}]   ;;  %s4322_s4 = inlined_call_operand.vmem [shape: f32[1,128], index: 4, kind: input, shape index: {}]   ;;  %s4323_s5 = inlined_call_operand.hbm [shape: f32[128,384], index: 5, kind: input, shape index: {}]   ;;  %s4324_s6 = inlined_call_operand.vmem [shape: f32[1,128], index: 6, kind: input, shape index: {}]   ;;  %s4325_s7 = inlined_call_operand.hbm [shape: f32[16,128], index: 7, kind: output, shape index: {}]  }
   0x1   :  { %14 = vsyncpa [#allocation6 + $0x1], 0 }
   0x2   :  { %15 = vsyncpa [#allocation9], 0 }
   0x3   :  { %16 = vsyncpa [#allocation12], 0 }
   0x4   :  { %17 = vsyncpa [#allocation7], 0 }
   0x5   :  { %19 = vsyncpa [#allocation7 + $0x1], 0  ;;  %s3579_s24 = smov 0   ;;  %s3581_s25 = smov 0  }
   0x6   :  { %s3583_s26 = smov 0   ;;  %s3585_s27 = smov 0  }
   0x7 LB: > { %s3600_s28 = sadd.s32 4294967295, %s3527_s27   ;;  %s2756_s29 = sadd.s32 4294967294, %s3527_s27   ;;  %s3527_s27 = sphi %s3585_s27, %s4351_s27   ;;  %s3523_s26 = sphi %s3583_s26, %s4350_s26   ;;  %s3519_s25 = sphi %s3581_s25, %s4349_s25   ;;  %s3515_s24 = sphi %s3579_s24, %s4348_s24  }
   0x8   : > { %p45_p0 = scmp.ne.s32.totalorder %s3519_s25, %s3515_s24  ;;  %p4326_p1 = scmp.eq.s32.totalorder %s3600_s28, 0 }
   0x9   : > { %p201_p3 = scmp.eq.s32.totalorder %s2756_s29, 1  ;;  %p2757_p5 = scmp.ge.s32.totalorder %s3527_s27, 1 }
   0xa   : > { %p3609_p4 = por %p4326_p1, %p45_p0  ;;  %p208_p7 = scmp.lt.s32.totalorder %s3527_s27, 3 }
   0xb   : > { %p3614_p6 = por %p201_p3, %p45_p0  ;;  %s3529_s10 = smov [#allocation8]  }
   0xc   : > { %s4330_s30 = scalar_select %p3609_p4, 1, 0 }
   0xd   : > { %s4331_s8 = scalar_select %p3614_p6, 1, 0 }
   0xe   : > { %p3619_p8 = pnand %p2757_p5, %p208_p7  ;;  %s220_s11 = sshll.u32 %s3529_s10, 4  ;;  %s3623_s11 = int_to_ptr.vmem [resolvable:$true] %s220_s11 }
   0xf   : > { %4332 = sst [smem:[#allocation18_spill]] %s4331_s8  ;;  %s3530_s13 = smov [#allocation10]  }
  0x10   : > { %s4333_s9 = scalar_select %p3619_p8, 1, 0 }
  0x11   : > { %p3273_p9 = pneg %p3619_p8  ;;  %s236_s14 = sshll.u32 %s3530_s13, 4  ;;  %s3634_s14 = int_to_ptr.vmem [resolvable:$true] %s236_s14 }
  0x12   : > { %s3531_s15 = smov [#allocation11]   ;;  %s3339_s19 = scalar_lea.hbm %s4319_s1, 1152 }
  0x13   : > { %p3630_p11 = pnand %p3273_p9, %p4326_p1  ;;  %s3636_s16 = sshll.u32 %s3531_s15, 4  ;;  %s253_s16 = int_to_ptr.vmem [resolvable:$true] %s3636_s16 }
  0x14   : > { %p3340_p12 = scmp.ne.s32.totalorder %s4319_s1, %s3339_s19  ;;  %p3346_p5 = scmp.lt.u32.totalorder %s3339_s19, %s4319_s1 }
  0x15   : > { %p3646_p13 = pneg %p3630_p11 }
  0x17   : > { %p3342_p0 = pnand %p3646_p13, %p3340_p12 }
  0x19   : > { %p3343_p3 = pneg %p3342_p0 }
  0x1b   : > { %p3348_p7 = pnand %p3346_p5, %p3343_p3 }
  0x1d   : > { %3351 = shalt.err (!%p3348_p7)
}
  0x1e   : > { %s3352_s10 = scalar_lea.vmem %s3623_s11, 1152  ;;  %p3360_p2 = scmp.lt.s32.totalorder %s3623_s11, %s3623_s11 }
  0x1f   : > { %p3353_p9 = scmp.ne.s32.totalorder %s3623_s11, %s3352_s10  ;;  %p3361_p6 = scmp.lt.s32.totalorder %s3352_s10, %s3352_s10 }
  0x21   : > { %p3355_p10 = pnand %p3353_p9, %p3646_p13  ;;  %p3362_p12 = por %p3361_p6, %p3360_p2 }
  0x23   : > { %p3356_p1 = pneg %p3355_p10 }
  0x25   : > { %p3363_p0 = pnand %p3362_p12, %p3356_p1 }
  0x27   : > { %3366 = shalt.err (!%p3363_p0)
}
  0x28   : > { %s3532_s13 = smov 384   ;;  %s3533_s15 = smov 24  }
  0x29   : > { %3276 = dma.hbm_to_vmem [thread:$0]  (!%p3630_p11), %s4319_s1, 1152, %s3623_s11, [#allocation9], %s3532_s13, %s3532_s13, %s3533_s15  }
  0x2a   : > { %s3367_s21 = scalar_lea.hbm %s4321_s3, 6144 }
  0x2b   : > { %p3368_p1 = scmp.ne.s32.totalorder %s4321_s3, %s3367_s21  ;;  %p3374_p10 = scmp.lt.u32.totalorder %s3367_s21, %s4321_s3 }
  0x2d   : > { %p3370_p2 = pnand %p3368_p1, %p3646_p13 }
  0x2f   : > { %p3371_p6 = pneg %p3370_p2 }
  0x31   : > { %p3376_p3 = pnand %p3374_p10, %p3371_p6 }
  0x33   : > { %3379 = shalt.err (!%p3376_p3)
}
  0x34   : > { %s3380_s11 = scalar_lea.vmem %s3634_s14, 6144  ;;  %p3388_p12 = scmp.lt.s32.totalorder %s3634_s14, %s3634_s14 }
  0x35   : > { %p3381_p5 = scmp.ne.s32.totalorder %s3634_s14, %s3380_s11  ;;  %p3389_p0 = scmp.lt.s32.totalorder %s3380_s11, %s3380_s11 }
  0x37   : > { %p3383_p7 = pnand %p3381_p5, %p3646_p13  ;;  %p3390_p1 = por %p3389_p0, %p3388_p12 }
  0x39   : > { %p3384_p9 = pneg %p3383_p7 }
  0x3b   : > { %p3391_p2 = pnand %p3390_p1, %p3384_p9 }
  0x3d   : > { %3394 = shalt.err (!%p3391_p2)
}
  0x3e   : > { %3279 = dma.hbm_to_vmem [thread:$0]  (!%p3630_p11), %s4321_s3, 6144, %s3634_s14, [#allocation9], %s3532_s13, %s3532_s13, %s3533_s15  }
  0x3f   : > { %s3395_s20 = scalar_lea.hbm %s4323_s5, 6144 }
  0x40   : > { %p3396_p6 = scmp.ne.s32.totalorder %s4323_s5, %s3395_s20  ;;  %p3402_p5 = scmp.lt.u32.totalorder %s3395_s20, %s4323_s5 }
  0x42   : > { %p3398_p10 = pnand %p3396_p6, %p3646_p13 }
  0x44   : > { %p3399_p3 = pneg %p3398_p10 }
  0x46   : > { %p3404_p7 = pnand %p3402_p5, %p3399_p3 }
  0x48   : > { %3407 = shalt.err (!%p3404_p7)
}
  0x49   : > { %s3408_s11 = scalar_lea.vmem %s253_s16, 6144  ;;  %p3416_p1 = scmp.lt.s32.totalorder %s253_s16, %s253_s16 }
  0x4a   : > { %p3409_p9 = scmp.ne.s32.totalorder %s253_s16, %s3408_s11  ;;  %p3417_p2 = scmp.lt.s32.totalorder %s3408_s11, %s3408_s11 }
  0x4c   : > { %p3411_p12 = pnand %p3409_p9, %p3646_p13  ;;  %p3418_p4 = por %p3417_p2, %p3416_p1 }
  0x4e   : > { %p3412_p0 = pneg %p3411_p12 }
  0x50   : > { %p3419_p8 = pnand %p3418_p4, %p3412_p0 }
  0x52   : > { %3422 = shalt.err (!%p3419_p8)
}
  0x53   : > { %3282 = dma.hbm_to_vmem [thread:$0]  (!%p3630_p11), %s4323_s5, 6144, %s253_s16, [#allocation12], %s3532_s13, %s3532_s13, %s3533_s15  }
  0x54   : > { %s3719_s22 = sadd.s32 1, %s3527_s27   ;;  %s32_s17 = sadd.s32 1, %s3523_s26 }
  0x55   : > { %s29_s12 = ssub.s32 %s3527_s27, %s3719_s22  ;;  %p39_p8 = scmp.ne.s32.totalorder %s3523_s26, %s3519_s25 }
  0x56   : > { %p30_p4 = scmp.eq.s32.totalorder %s29_s12, 0  ;;  %p40_p13 = scmp.eq.s32.totalorder %s3527_s27, 0 }
  0x57   : > { %p3294_p6 = scmp.lt.s32.totalorder %s3527_s27, 2  ;;  %p4336_p3 = scmp.eq.s32.totalorder %s3600_s28, 1 }
  0x58   : > { %s3729_s18 = scalar_select %p30_p4, %s3523_s26, %s32_s17  }
  0x59   : > { %p41_p10 = por %p40_p13, %p39_p8  ;;  %p3733_p5 = por %p4336_p3, %p39_p8 }
  0x5a   : > { %s269_s20 = sand.u32 1, %s3523_s26   ;;  %s2831_s21 = sshll.u32 %s3527_s27, 11 }
  0x5b   : > { %s2762_s16 = sshll.u32 %s269_s20, 7  ;;  %s3742_s23 = scalar_lea.hbm %s4318_s0, %s2831_s21 }
  0x5c   : > { %s273_s29 = scalar_lea.vmem [#allocation5], %s2762_s16  ;;  %p3744_p11 = pnand %p3294_p6, %p41_p10 }
  0x5d   : > { %s281_s10 = sshll.u32 %s273_s29, 4  ;;  %s3750_s14 = scalar_lea.sflag [#allocation6], %s269_s20  ;;  %s3748_s10 = int_to_ptr.vmem [resolvable:$true] %s281_s10 }
  0x5e   : > { %s3423_s8 = scalar_lea.hbm %s3742_s23, 2048  ;;  %p3425_p9 = pneg %p3744_p11 }
  0x5f   : > { %p3424_p7 = scmp.ne.s32.totalorder %s3742_s23, %s3423_s8  ;;  %s3428_s21 = scalar_lea.hbm %s4318_s0, 4096 }
  0x60   : > { %p3429_p1 = scmp.lt.u32.totalorder %s3742_s23, %s4318_s0  ;;  %p3430_p2 = scmp.lt.u32.totalorder %s3428_s21, %s3423_s8 }
  0x61   : > { %p3426_p12 = pnand %p3425_p9, %p3424_p7  ;;  %p3432_p8 = scmp.lt.u32.totalorder %s3423_s8, %s3742_s23 }
  0x62   : > { %p3431_p4 = por %p3430_p2, %p3429_p1 }
  0x63   : > { %p3427_p0 = pneg %p3426_p12 }
  0x64   : > { %p3433_p13 = por %p3432_p8, %p3431_p4 }
  0x66   : > { %p3434_p6 = pnand %p3433_p13, %p3427_p0 }
  0x68   : > { %3437 = shalt.err (!%p3434_p6)
}
  0x69   : > { %s3438_s20 = scalar_lea.vmem %s3748_s10, 2048  ;;  %s3534_s15 = smov [#allocation5]  }
  0x6a   : > { %p3439_p10 = scmp.ne.s32.totalorder %s3748_s10, %s3438_s20  ;;  %s3443_s29 = sshll.u32 %s3534_s15, 4  ;;  %s3444_s29 = int_to_ptr.vmem [resolvable:$false] %s3443_s29 }
  0x6b   : > { %s3445_s12 = scalar_lea.vmem %s3444_s29, 4096  ;;  %p3446_p12 = scmp.lt.s32.totalorder %s3748_s10, %s3444_s29 }
  0x6c   : > { %p3441_p3 = pnand %p3439_p10, %p3425_p9  ;;  %p3447_p1 = scmp.lt.s32.totalorder %s3445_s12, %s3438_s20 }
  0x6e   : > { %p3442_p7 = pneg %p3441_p3  ;;  %p3448_p2 = por %p3447_p1, %p3446_p12 }
  0x70   : > { %p3449_p4 = pnand %p3448_p2, %p3442_p7 }
  0x72   : > { %3452 = shalt.err (!%p3449_p4)
}
  0x73   : > { %s3535_s8 = smov 128   ;;  %s3536_s17 = smov 8  }
  0x74   : > { %3286 = dma.hbm_to_vmem [thread:$0]  (!%p3744_p11), %s3742_s23, 2048, %s3748_s10, %s3750_s14, %s3535_s8, %s3535_s8, %s3536_s17  }
  0x75   : > { %p4339_p9 = scmp.ne.s32.totalorder %s4333_s9, 0 }
  0x76   : > { %s3781_s21 = sand.u32 (!%p4339_p9), 1, %s3519_s25   ;;  %p4340_p0 = scmp.ne.s32.totalorder (!%p4339_p9), %s4330_s30, 0 }
  0x77   : > { %293 = sbr.rel (%p4339_p9) target bundleno = 1002 (0x3ea), region = 48  ;;  %s2767_s16 = sshll.u32 (!%p4339_p9), %s3781_s21, 7 }
  0x78   : > { %s296_s13 = scalar_lea.sflag (!%p4339_p9), [#allocation6], %s3781_s21  ;;  %s3785_s20 = scalar_lea.vmem (!%p4339_p9), [#allocation5], %s2767_s16 }
  0x7e   : > { %3498 = dma.done.wait (%p4340_p0), %s296_s13, 2048  }
  0x7f   : > { %3500 = vsyncadd (%p4340_p0), %s296_s13, 4294965248  ;;  %p4341_p11 = scmp.eq.s32.totalorder %s3600_s28, 0 }
  0x81   : > { %3502 = dma.done.wait (%p4341_p11), [#allocation9], 7296   ;;  %p4342_p8 = pmov %p4341_p11 }
  0x83   : > { %3504 = vsyncadd (%p4342_p8), [#allocation9], 4294960000  ;;  %p4343_p13 = pmov %p4342_p8 }
  0x84   : > { %p4344_p6 = pmov %p4342_p8 }
  0x85   : > { %3506 = dma.done.wait (%p4343_p13), [#allocation12], 6144  }
  0x86   : > { %3508 = vsyncadd (%p4344_p6), [#allocation12], 4294961152  ;;  %vm343_vm0 = vcmask 155648   ;;  %v3537_v0 = vmov 0.0   ;;  %vm352_vm1 = vcmask 161792   ;;  %v451_v1 = vld [vmem:[#allocation8 + $0x8] sm:$0xff] }
  0x87   : > { %605 = vmatprep.mubr.f32.mxu0 %v3537_v0  ;;  %361 = vst [vmem:[#allocation3] sm:$0x1] %v3537_v0  ;;  %362 = vst [vmem:[#allocation3 + $0x18] sm:$0x1] %v3537_v0  ;;  %707 = vmatprep.mubr.f32.mxu1 %v3537_v0  ;;  %v454_v2 = vld [vmem:[#allocation8 + $0x20] sm:$0xff]  ;;  %vm409_vm2 = vcmask 162816  }
  0x88   : > { %363 = vst [vmem:[#allocation3 + $0x30] sm:$0x1] %v3537_v0  ;;  %364 = vst [vmem:[#allocation3 + $0x48] sm:$0x1] %v3537_v0  ;;  %v450_v3 = vld [vmem:[#allocation8] sm:$0xff]  ;;  %v3117_v4 = vpack.c.bf16 %v454_v2, %v451_v1  ;;  %v453_v5 = vld [vmem:[#allocation8 + $0x18] sm:$0xff] }
  0x89   : > { %365 = vst [vmem:[#allocation3 + $0x60] sm:$0x1] %v3537_v0  ;;  %366 = vst [vmem:[#allocation3 + $0x78] sm:$0x1] %v3537_v0  ;;  %v457_v6 = vld [vmem:[#allocation8 + $0x38] sm:$0xf]  ;;  %v3119_v7 = vpack.c.bf16 %v453_v5, %v450_v3 }
  0x8a   : > { %367 = vst [vmem:[#allocation3 + $0x90] sm:$0x1] %v3537_v0  ;;  %368 = vst [vmem:[#allocation3 + $0xa8] sm:$0x1] %v3537_v0  ;;  %vm531_vm3 = vcmask 1043456   ;;  %v393_v8 = vld [vmem:[%s3785_s20] sm:$0xff]  ;;  %3118 = vmatprep.subr.bf16.mxu0 %v3117_v4  ;;  %3253 = vmatprep.subr.bf16.mxu1 %v3117_v4 }
  0x8b   : > { %369 = vst [vmem:[#allocation3 + $0x11] sm:$0x7f] %v3537_v0  ;;  %370 = vst [vmem:[#allocation3 + $0x29] sm:$0x7f] %v3537_v0  ;;  %v405_v9 = vld [vmem:[%s3785_s20 + $0x60] sm:$0xff]  ;;  %v452_v10 = vld [vmem:[#allocation8 + $0x10] sm:$0xff]  ;;  %3120 = vmatpush1.bf16.msra.mxu0 %v3119_v7  ;;  %3255 = vmatpush1.bf16.msra.mxu1 %v3119_v7 }
  0x8c   : > { %371 = vst [vmem:[#allocation3 + $0x41] sm:$0x7f] %v3537_v0  ;;  %372 = vst [vmem:[#allocation3 + $0x59] sm:$0x7f] %v3537_v0  ;;  %v455_v11 = vld [vmem:[#allocation8 + $0x28] sm:$0xff]  ;;  %v395_v15 = vld [vmem:[%s3785_s20 + $0x10] sm:$0xff]  ;;  %2772 = vmatprep.subr.msk.mxu0 %vm531_vm3, %v457_v6  ;;  %3254 = vmatprep.subr.msk.mxu1 %vm531_vm3, %v457_v6 }
  0x8d   : > { %373 = vst [vmem:[#allocation3 + $0x71] sm:$0x7f] %v3537_v0  ;;  %374 = vst [vmem:[#allocation3 + $0x89] sm:$0x7f] %v3537_v0  ;;  %v394_v12 = vld [vmem:[%s3785_s20 + $0x8] sm:$0xff]  ;;  %v407_v16 = vld [vmem:[%s3785_s20 + $0x70] sm:$0xff]  ;;  %v3121_v17 = vpack.c.bf16 %v455_v11, %v452_v10 }
  0x8e   : > { %375 = vst [vmem:[#allocation3 + $0xa1] sm:$0x7f] %v3537_v0  ;;  %376 = vst [vmem:[#allocation3 + $0xb9] sm:$0x7f] %v3537_v0  ;;  %v406_v13 = vld [vmem:[%s3785_s20 + $0x68] sm:$0xff]  ;;  %v396_v18 = vld [vmem:[%s3785_s20 + $0x18] sm:$0xff] }
  0x8f   : > { %377 = vst [vmem:[#allocation4] sm:$0x1] %v3537_v0  ;;  %378 = vst [vmem:[#allocation4 + $0x18] sm:$0x1] %v3537_v0  ;;  %v456_v14 = vld [vmem:[#allocation8 + $0x30] sm:$0xf] }
  0x90   : > { %379 = vst [vmem:[#allocation4 + $0x30] sm:$0x1] %v3537_v0  ;;  %380 = vst [vmem:[#allocation4 + $0x48] sm:$0x1] %v3537_v0  ;;  %v408_v19 = vld [vmem:[%s3785_s20 + $0x78] sm:$0xff]  ;;  %v397_v20 = vld [vmem:[%s3785_s20 + $0x20] sm:$0xff]  ;;  %2773 = vmatpush1.msk.msra.mxu0 %vm531_vm3, %v456_v14  ;;  %3256 = vmatpush1.msk.msra.mxu1 %vm531_vm3, %v456_v14 }
  0x91   : > { %381 = vst [vmem:[#allocation4 + $0x60] sm:$0x1] %v3537_v0  ;;  %382 = vst [vmem:[#allocation4 + $0x78] sm:$0x1] %v3537_v0  ;;  %v398_v21 = vld [vmem:[%s3785_s20 + $0x28] sm:$0xff]  ;;  %v399_v22 = vld [vmem:[%s3785_s20 + $0x30] sm:$0xff]  ;;  %3122 = vmatprep.subr.bf16.mxu1 %v3121_v17 }
  0x92   : > { %383 = vst [vmem:[#allocation4 + $0x90] sm:$0x1] %v3537_v0  ;;  %384 = vst [vmem:[#allocation4 + $0xa8] sm:$0x1] %v3537_v0  ;;  %v400_v23 = vld [vmem:[%s3785_s20 + $0x38] sm:$0xff]  ;;  %v401_v24 = vld [vmem:[%s3785_s20 + $0x40] sm:$0xff] }
  0x93   : > { %385 = vst [vmem:[#allocation4 + $0x11] sm:$0x7f] %v3537_v0  ;;  %386 = vst [vmem:[#allocation4 + $0x29] sm:$0x7f] %v3537_v0  ;;  %v402_v25 = vld [vmem:[%s3785_s20 + $0x48] sm:$0xff]  ;;  %v403_v26 = vld [vmem:[%s3785_s20 + $0x50] sm:$0xff] }
  0x94   : > { %387 = vst [vmem:[#allocation4 + $0x41] sm:$0x7f] %v3537_v0  ;;  %388 = vst [vmem:[#allocation4 + $0x59] sm:$0x7f] %v3537_v0  ;;  %v404_v27 = vld [vmem:[%s3785_s20 + $0x58] sm:$0xff]  ;;  %v1205_v29 = vld [vmem:[#allocation10 + $0x28] sm:$0xff] }
  0x95   : > { %389 = vst [vmem:[#allocation4 + $0x71] sm:$0x7f] %v3537_v0  ;;  %390 = vst [vmem:[#allocation4 + $0x89] sm:$0x7f] %v3537_v0  ;;  %v1202_v28 = vld [vmem:[#allocation10 + $0x10] sm:$0xff]  ;;  %v1208_v34 = vld [vmem:[#allocation10 + $0x40] sm:$0xff] }
  0x96   : > { %391 = vst [vmem:[#allocation4 + $0xa1] sm:$0x7f] %v3537_v0  ;;  %392 = vst [vmem:[#allocation4 + $0xb9] sm:$0x7f] %v3537_v0  ;;  %v458_v30 = vld [vmem:[#allocation8 + $0x40] sm:$0xf]  ;;  %v3157_v33 = vpack.c.bf16 %v1205_v29, %v1202_v28 }
  0x97   : > { %344 = vst.msk [vmem:[#allocation2] sm:$0x1] %vm343_vm0, %v3537_v0  ;;  %345 = vst.msk [vmem:[#allocation2 + $0x18] sm:$0x1] %vm343_vm0, %v3537_v0  ;;  %v1211_v35 = vld [vmem:[#allocation10 + $0x58] sm:$0xff]  ;;  %v1201_v36 = vld [vmem:[#allocation10 + $0x8] sm:$0xff] }
  0x98   : > { %346 = vst.msk [vmem:[#allocation2 + $0x30] sm:$0x1] %vm343_vm0, %v3537_v0  ;;  %347 = vst.msk [vmem:[#allocation2 + $0x48] sm:$0x1] %vm343_vm0, %v3537_v0  ;;  %v1204_v37 = vld [vmem:[#allocation10 + $0x20] sm:$0xff]  ;;  %3158 = vmatprep.subr.bf16.mxu0 %v3157_v33  ;;  %v3161_v40 = vpack.c.bf16 %v1211_v35, %v1208_v34  ;;  %v1214_v44 = vld [vmem:[#allocation10 + $0x70] sm:$0xff] }
  0x99   : > { %348 = vst.msk [vmem:[#allocation2 + $0x60] sm:$0x1] %vm343_vm0, %v3537_v0  ;;  %349 = vst.msk [vmem:[#allocation2 + $0x78] sm:$0x1] %vm343_vm0, %v3537_v0  ;;  %v3125_v41 = vpack.c.bf16 %v1204_v37, %v1201_v36  ;;  %v1217_v45 = vld [vmem:[#allocation10 + $0x88] sm:$0xff]  ;;  %v1200_v53 = vld [vmem:[#allocation10] sm:$0xff] }
  0x9a   : > { %350 = vst.msk [vmem:[#allocation2 + $0x90] sm:$0x1] %vm343_vm0, %v3537_v0  ;;  %351 = vst.msk [vmem:[#allocation2 + $0xa8] sm:$0x1] %vm343_vm0, %v3537_v0  ;;  %v3165_v46 = vpack.c.bf16 %v1217_v45, %v1214_v44  ;;  %v1203_v54 = vld [vmem:[#allocation10 + $0x18] sm:$0xff]  ;;  %v1210_v6 = vld [vmem:[#allocation10 + $0x50] sm:$0xff] }
  0x9b   : > { %353 = vst.msk [vmem:[#allocation2 + $0x11] sm:$0x7f] %vm352_vm1, %v3537_v0  ;;  %354 = vst.msk [vmem:[#allocation2 + $0x29] sm:$0x7f] %vm352_vm1, %v3537_v0  ;;  %v3127_v56 = vpack.c.bf16 %v1203_v54, %v1200_v53  ;;  %v1207_v5 = vld [vmem:[#allocation10 + $0x38] sm:$0xff]  ;;  %v1206_v7 = vld [vmem:[#allocation10 + $0x30] sm:$0xff] }
  0x9c   : > { %355 = vst.msk [vmem:[#allocation2 + $0x41] sm:$0x7f] %vm352_vm1, %v3537_v0  ;;  %356 = vst.msk [vmem:[#allocation2 + $0x59] sm:$0x7f] %vm352_vm1, %v3537_v0  ;;  %v1220_v11 = vld [vmem:[#allocation10 + $0xa0] sm:$0xff]  ;;  %v1213_v14 = vld [vmem:[#allocation10 + $0x68] sm:$0xff] }
  0x9d   : > { %357 = vst.msk [vmem:[#allocation2 + $0x71] sm:$0x7f] %vm352_vm1, %v3537_v0  ;;  %358 = vst.msk [vmem:[#allocation2 + $0x89] sm:$0x7f] %vm352_vm1, %v3537_v0  ;;  %v1225_v29 = vld [vmem:[#allocation10 + $0xc8] sm:$0xff]  ;;  %v1232_v35 = vld [vmem:[#allocation10 + $0x100] sm:$0xff] }
  0x9e   : > { %359 = vst.msk [vmem:[#allocation2 + $0xa1] sm:$0x7f] %vm352_vm1, %v3537_v0  ;;  %360 = vst.msk [vmem:[#allocation2 + $0xb9] sm:$0x7f] %vm352_vm1, %v3537_v0  ;;  %v1235_v36 = vld [vmem:[#allocation10 + $0x118] sm:$0xff]  ;;  %v1237_v44 = vld [vmem:[#allocation10 + $0x128] sm:$0xff] }
  0x9f   : > { %410 = vst.msk [vmem:[#allocation2 + $0x1] sm:$0xff] %vm409_vm2, %v393_v8  ;;  %422 = vst.msk [vmem:[#allocation2 + $0x91] sm:$0xff] %vm409_vm2, %v405_v9  ;;  %v3129_v8 = vpack.c.bf16 %v1210_v6, %v1207_v5  ;;  %v1209_v9 = vld [vmem:[#allocation10 + $0x48] sm:$0xff]  ;;  %v3177_v37 = vpack.c.bf16 %v1235_v36, %v1232_v35  ;;  %v1240_v45 = vld [vmem:[#allocation10 + $0x140] sm:$0xff]  ;;  %vm951_vm4 = vcmask 1046528   ;;  %vm1048_vm5 = vcmask 1045504  }
  0xa0   : > { %411 = vst.msk [vmem:[#allocation2 + $0x9] sm:$0xff] %vm409_vm2, %v394_v12  ;;  %423 = vst.msk [vmem:[#allocation2 + $0x99] sm:$0xff] %vm409_vm2, %v406_v13  ;;  %v3131_v10 = vpack.c.bf16 %v1209_v9, %v1206_v7  ;;  %v1223_v12 = vld [vmem:[#allocation10 + $0xb8] sm:$0xff]  ;;  %v1246_v54 = vld [vmem:[#allocation10 + $0x170] sm:$0xff]  ;;  %vm2627_vm6 = vcmask 1041409   ;;  %vm2629_vm7 = vcmask 1042434  }
  0xa1   : > { %412 = vst.msk [vmem:[#allocation2 + $0x19] sm:$0xff] %vm409_vm2, %v395_v15  ;;  %424 = vst.msk [vmem:[#allocation2 + $0xa9] sm:$0xff] %vm409_vm2, %v407_v16  ;;  %v3169_v13 = vpack.c.bf16 %v1223_v12, %v1220_v11  ;;  %v1216_v15 = vld [vmem:[#allocation10 + $0x80] sm:$0xff]  ;;  %v1906_v11 = vld [vmem:[#allocation11 + $0x8] sm:$0xff]  ;;  %vm2631_vm8 = vcmask 1043459   ;;  %vm2633_vm9 = vcmask 1044484  }
  0xa2   : > { %413 = vst.msk [vmem:[#allocation2 + $0x21] sm:$0xff] %vm409_vm2, %v396_v18  ;;  %425 = vst.msk [vmem:[#allocation2 + $0xb1] sm:$0xff] %vm409_vm2, %v408_v19  ;;  %v1212_v16 = vld [vmem:[#allocation10 + $0x60] sm:$0xff]  ;;  %v1215_v18 = vld [vmem:[#allocation10 + $0x78] sm:$0xff]  ;;  %vm2635_vm10 = vcmask 1045509   ;;  %vm2637_vm11 = vcmask 1046534  }
  0xa3   : > { %414 = vst.msk [vmem:[#allocation2 + $0x31] sm:$0xff] %vm409_vm2, %v397_v20  ;;  %415 = vst.msk [vmem:[#allocation2 + $0x39] sm:$0xff] %vm409_vm2, %v398_v21  ;;  %v3135_v19 = vpack.c.bf16 %v1215_v18, %v1212_v16  ;;  %v1219_v20 = vld [vmem:[#allocation10 + $0x98] sm:$0xff]  ;;  %v1222_v21 = vld [vmem:[#allocation10 + $0xb0] sm:$0xff]  ;;  %s2771_s15 = sshll.u32 %s3781_s21, 3  ;;  %s2827_s29 = sshll.u32 %s3600_s28, 7 }
  0xa4   : > { %416 = vst.msk [vmem:[#allocation2 + $0x49] sm:$0xff] %vm409_vm2, %v399_v22  ;;  %417 = vst.msk [vmem:[#allocation2 + $0x51] sm:$0xff] %vm409_vm2, %v400_v23  ;;  %v1226_v22 = vld [vmem:[#allocation10 + $0xd0] sm:$0xff]  ;;  %v3137_v23 = vpack.c.bf16 %v1222_v21, %v1219_v20  ;;  %v1909_v12 = vld [vmem:[#allocation11 + $0x20] sm:$0xff]  ;;  %s341_s12 = scalar_lea.vmem [#allocation13], %s2771_s15  ;;  %vm2639_vm12 = vcmask 1047559   ;;  %s4274_s13 = scalar_lea.hbm %s4325_s7, %s2827_s29 }
  0xa5   : > { %418 = vst.msk [vmem:[#allocation2 + $0x61] sm:$0xff] %vm409_vm2, %v401_v24  ;;  %419 = vst.msk [vmem:[#allocation2 + $0x69] sm:$0xff] %vm409_vm2, %v402_v25  ;;  %v1229_v24 = vld [vmem:[#allocation10 + $0xe8] sm:$0xff]  ;;  %v1218_v25 = vld [vmem:[#allocation10 + $0x90] sm:$0xff]  ;;  %s2657_s8 = sshll.u32 %s341_s12, 4  ;;  %s2644_s20 = scalar_lea.sflag [#allocation7], %s3781_s21  ;;  %s4276_s8 = int_to_ptr.vmem [resolvable:$true] %s2657_s8 }
  0xa6   : > { %420 = vst.msk [vmem:[#allocation2 + $0x79] sm:$0xff] %vm409_vm2, %v403_v26  ;;  %421 = vst.msk [vmem:[#allocation2 + $0x81] sm:$0xff] %vm409_vm2, %v404_v27  ;;  %v426_v31 = vld [vmem:[#allocation2] sm:$0xff]  ;;  %v3893_v32 = vld [vmem:[#allocation2 + $0x90] sm:$0xff]  ;;  %v3173_v27 = vpack.c.bf16 %v1229_v24, %v1226_v22  ;;  %s3453_s30 = scalar_lea.vmem %s4276_s8, 128  ;;  %s3538_s28 = smov [#allocation13]  }
  0xa7   : > { %2774 = vmatmul.mubr.msk.f32.vlgmr.msra.gmra.mrb[0].mxu0 %vm409_vm2, %v426_v31  ;;  %2792 = vmatmul.mubr.msk.f32.vlgmr.msra.gmra.mrb[0].mxu1 %vm409_vm2, %v3893_v32  ;;  %v427_v38 = vld [vmem:[#allocation2 + $0x8] sm:$0xff]  ;;  %v3899_v39 = vld [vmem:[#allocation2 + $0x98] sm:$0xff]  ;;  %v428_v42 = vld [vmem:[#allocation2 + $0x10] sm:$0xff]  ;;  %p3454_p10 = scmp.ne.s32.totalorder %s4276_s8, %s3453_s30  ;;  %s3457_s9 = sshll.u32 %s3538_s28, 4  ;;  %s3458_s9 = int_to_ptr.vmem [resolvable:$false] %s3457_s9 }
  0xa8   : > { %3124 = vmatpush3.bf16.msra.mxu1 %v3121_v17  ;;  %611 = vmatprep.mubr.f32.mxu0 %v3537_v0  ;;  %v3908_v43 = vld [vmem:[#allocation2 + $0xa0] sm:$0xff]  ;;  %v429_v47 = vld [vmem:[#allocation2 + $0x18] sm:$0xff]  ;;  %v3916_v48 = vld [vmem:[#allocation2 + $0xa8] sm:$0xff]  ;;  %v3133_v17 = vpack.c.bf16 %v1216_v15, %v1213_v14  ;;  %s3459_s23 = scalar_lea.vmem %s3458_s9, 256  ;;  %p3460_p12 = scmp.lt.s32.totalorder %s4276_s8, %s3458_s9 }
  0xa9   : > { %713 = vmatprep.mubr.f32.mxu1 %v3537_v0  ;;  %2943 = vmatprep.subr.msk.mxu1 %vm531_vm3, %v458_v30  ;;  %v430_v49 = vld [vmem:[#allocation2 + $0x20] sm:$0xff]  ;;  %v3923_v50 = vld [vmem:[#allocation2 + $0xb0] sm:$0xff]  ;;  %v431_v51 = vld [vmem:[#allocation2 + $0x28] sm:$0xff]  ;;  %p3455_p3 = pnand %p3454_p10, %p3733_p5  ;;  %p3461_p1 = scmp.lt.s32.totalorder %s3459_s23, %s3453_s30 }
  0xaa   : > { %3160 = vmatpush3.bf16.msra.mxu0 %v3157_v33  ;;  %v3930_v52 = vld [vmem:[#allocation2 + $0xb8] sm:$0xff]  ;;  %v432_v55 = vld [vmem:[#allocation2 + $0x30] sm:$0xff]  ;;  %v434_v58 = vld [vmem:[#allocation2 + $0x40] sm:$0xff] }
  0xab   : > { %2775 = vmatmul.mubr.msk.f32.gmra.mrb[2].mxu0 %vm409_vm2, %v427_v38  ;;  %2793 = vmatmul.mubr.msk.f32.gmra.mrb[2].mxu1 %vm409_vm2, %v3899_v39  ;;  %v433_v57 = vld [vmem:[#allocation2 + $0x38] sm:$0xff]  ;;  %v435_v59 = vld [vmem:[#allocation2 + $0x48] sm:$0xff]  ;;  %v436_v60 = vld [vmem:[#allocation2 + $0x50] sm:$0xff]  ;;  %p3456_p7 = pneg %p3455_p3  ;;  %p3462_p2 = por %p3461_p1, %p3460_p12 }
  0xac   : > { %617 = vmatprep.mubr.f32.mxu0 %v3537_v0  ;;  %719 = vmatprep.mubr.f32.mxu1 %v3537_v0  ;;  %v437_v61 = vld [vmem:[#allocation2 + $0x58] sm:$0xff]  ;;  %v438_v62 = vld [vmem:[#allocation2 + $0x60] sm:$0xff]  ;;  %v439_v63 = vld [vmem:[#allocation2 + $0x68] sm:$0xff] }
  0xad   : > { %2944 = vmatpush3.msk.msra.mxu1 %vm531_vm3, %v458_v30  ;;  %3162 = vmatprep.subr.bf16.mxu0 %v3161_v40  ;;  %v440_v1 = vld [vmem:[#allocation2 + $0x70] sm:$0xff]  ;;  %v441_v2 = vld [vmem:[#allocation2 + $0x78] sm:$0xff]  ;;  %v442_v3 = vld [vmem:[#allocation2 + $0x80] sm:$0xff]  ;;  %p3463_p4 = pnand %p3462_p2, %p3456_p7 }
  0xae   : > { %3126 = vmatprep.subr.bf16.mxu1 %v3125_v41  ;;  %3164 = vmatpush3.bf16.msra.mxu0 %v3161_v40  ;;  %v443_v4 = vld [vmem:[#allocation2 + $0x88] sm:$0xff]  ;;  %v1221_v26 = vld [vmem:[#allocation10 + $0xa8] sm:$0xff]  ;;  %v1227_v33 = vld [vmem:[#allocation10 + $0xd8] sm:$0xff] }
  0xaf   : > { %2776 = vmatmul.mubr.msk.f32.gmra.mrb[4].mxu0 %vm409_vm2, %v428_v42  ;;  %2794 = vmatmul.mubr.msk.f32.gmra.mrb[4].mxu1 %vm409_vm2, %v3908_v43  ;;  %v3139_v28 = vpack.c.bf16 %v1221_v26, %v1218_v25  ;;  %v1228_v30 = vld [vmem:[#allocation10 + $0xe0] sm:$0xff]  ;;  %v1230_v41 = vld [vmem:[#allocation10 + $0xf0] sm:$0xff] }
  0xb0   : > { %622 = vmatprep.mubr.f32.mxu0 %v3537_v0  ;;  %724 = vmatprep.mubr.f32.mxu1 %v3537_v0  ;;  %v1907_v18 = vld [vmem:[#allocation11 + $0x10] sm:$0xff] }
  0xb1   : > { %3166 = vmatprep.subr.bf16.mxu0 %v3165_v46 }
  0xb2   : > { %3168 = vmatpush3.bf16.msra.mxu0 %v3165_v46  ;;  %v3149_v46 = vpack.c.bf16 %v1240_v45, %v1237_v44 }
  0xb3   : > { %2777 = vmatmul.mubr.msk.f32.gmra.mrb[6].mxu0 %vm409_vm2, %v429_v47  ;;  %2795 = vmatmul.mubr.msk.f32.gmra.mrb[6].mxu1 %vm409_vm2, %v3916_v48 }
  0xb4   : > { %628 = vmatprep.mubr.f32.mxu0 %v3537_v0  ;;  %730 = vmatprep.mubr.f32.mxu1 %v3537_v0 }
  0xb5   : > { %3170 = vmatprep.subr.bf16.mxu0 %v3169_v13 }
  0xb6   : > { %3172 = vmatpush3.bf16.msra.mxu0 %v3169_v13 }
  0xb7   : > { %2778 = vmatmul.mubr.msk.f32.gmra.mrb[8].mxu0 %vm409_vm2, %v430_v49  ;;  %2796 = vmatmul.mubr.msk.f32.gmra.mrb[8].mxu1 %vm409_vm2, %v3923_v50 }
  0xb8   : > { %634 = vmatprep.mubr.f32.mxu0 %v3537_v0  ;;  %736 = vmatprep.mubr.f32.mxu1 %v3537_v0 }
  0xb9   : > { %3174 = vmatprep.subr.bf16.mxu0 %v3173_v27 }
  0xba   : > { %3176 = vmatpush3.bf16.msra.mxu0 %v3173_v27 }
  0xbb   : > { %2779 = vmatmul.mubr.msk.f32.gmra.mrb[10].mxu0 %vm409_vm2, %v431_v51  ;;  %2797 = vmatmul.mubr.msk.f32.gmra.mrb[10].mxu1 %vm409_vm2, %v3930_v52 }
  0xbc   : > { %639 = vmatprep.mubr.f32.mxu0 %v3537_v0  ;;  %2945 = vmatprep.mubr.msk.f32.mxu1 %vm409_vm2, %v426_v31  ;;  %v1224_v31 = vld [vmem:[#allocation10 + $0xc0] sm:$0xff] }
  0xbd   : > { %v3143_v34 = vpack.c.bf16 %v1227_v33, %v1224_v31  ;;  %3178 = vmatprep.subr.bf16.mxu0 %v3177_v37 }
  0xbe   : > { %3180 = vmatpush3.bf16.msra.mxu0 %v3177_v37 }
  0xbf   : > { %2780 = vmatmul.mubr.msk.f32.gmra.mrb[12].mxu0 %vm409_vm2, %v432_v55  ;;  %2946 = vmatmul.mubr.msk.f32.vlgmr.msra.gmra.mrb[12].mxu1 %vm409_vm2, %v427_v38  ;;  %v1231_v38 = vld [vmem:[#allocation10 + $0xf8] sm:$0xff] }
  0xc0   : > { %645 = vmatprep.mubr.f32.mxu0 %v3537_v0  ;;  %2948 = vmatprep.mubr.msk.f32.mxu1 %vm409_vm2, %v428_v42  ;;  %v1233_v42 = vld [vmem:[#allocation10 + $0x108] sm:$0xff] }
  0xc1   : > { %3128 = vmatpush1.bf16.msra.mxu1 %v3127_v56  ;;  %v1245_v56 = vld [vmem:[#allocation10 + $0x168] sm:$0xff] }
  0xc2   : > { %3130 = vmatprep.subr.bf16.mxu1 %v3129_v8 }
  0xc3   : > { %2781 = vmatmul.mubr.msk.f32.gmra.mrb[14].mxu0 %vm409_vm2, %v433_v57  ;;  %2949 = vmatmul.mubr.msk.f32.gmra.mrb[14].mxu1 %vm409_vm2, %v429_v47  ;;  %v1236_v47 = vld [vmem:[#allocation10 + $0x120] sm:$0xff] }
  0xc4   : > { %651 = vmatprep.mubr.f32.mxu0 %v3537_v0  ;;  %2951 = vmatprep.mubr.msk.f32.mxu1 %vm409_vm2, %v430_v49 }
  0xc5   : > { %3132 = vmatpush1.bf16.msra.mxu1 %v3131_v10 }
  0xc6   : > { %3134 = vmatprep.subr.bf16.mxu1 %v3133_v17  ;;  %v3189_v17 = vpack.c.bf16 %v1909_v12, %v1906_v11 }
  0xc7   : > { %2782 = vmatmul.mubr.msk.f32.gmra.mrb[16].mxu0 %vm409_vm2, %v434_v58  ;;  %2952 = vmatmul.mubr.msk.f32.gmra.mrb[16].mxu1 %vm409_vm2, %v431_v51  ;;  %v1241_v51 = vld [vmem:[#allocation10 + $0x148] sm:$0xff] }
  0xc8   : > { %656 = vmatprep.mubr.f32.mxu0 %v3537_v0  ;;  %2954 = vmatprep.mubr.msk.f32.mxu1 %vm409_vm2, %v432_v55  ;;  %v1242_v55 = vld [vmem:[#allocation10 + $0x150] sm:$0xff] }
  0xc9   : > { %3136 = vmatpush1.bf16.msra.mxu1 %v3135_v19  ;;  %v1910_v19 = vld [vmem:[#allocation11 + $0x28] sm:$0xff] }
  0xca   : > { %3138 = vmatprep.subr.bf16.mxu1 %v3137_v23  ;;  %v3994_v24 = vpack.c.bf16 %v1910_v19, %v1907_v18 }
  0xcb   : > { %2783 = vmatmul.mubr.msk.f32.gmra.mrb[18].mxu0 %vm409_vm2, %v435_v59  ;;  %2955 = vmatmul.mubr.msk.f32.gmra.mrb[18].mxu1 %vm409_vm2, %v433_v57 }
  0xcc   : > { %662 = vmatprep.mubr.f32.mxu0 %v3537_v0  ;;  %2957 = vmatprep.mubr.msk.f32.mxu1 %vm409_vm2, %v434_v58  ;;  %v3155_v58 = vpack.c.bf16 %v1245_v56, %v1242_v55 }
  0xcd   : > { %3140 = vmatpush1.bf16.msra.mxu1 %v3139_v28 }
  0xcf   : > { %2784 = vmatmul.mubr.msk.f32.gmra.mrb[20].mxu0 %vm409_vm2, %v436_v60  ;;  %2958 = vmatmul.mubr.msk.f32.gmra.mrb[20].mxu1 %vm409_vm2, %v435_v59  ;;  %v1244_v59 = vld [vmem:[#allocation10 + $0x160] sm:$0xff] }
  0xd0   : > { %668 = vmatprep.mubr.f32.mxu0 %v3537_v0  ;;  %2960 = vmatprep.mubr.msk.f32.mxu1 %vm409_vm2, %v436_v60  ;;  %v1247_v60 = vld [vmem:[#allocation10 + $0x178] sm:$0xff] }
  0xd3   : > { %2785 = vmatmul.mubr.msk.f32.gmra.mrb[22].mxu0 %vm409_vm2, %v437_v61  ;;  %2961 = vmatmul.mubr.msk.f32.gmra.mrb[22].mxu1 %vm409_vm2, %v437_v61  ;;  %v3185_v61 = vpack.c.bf16 %v1247_v60, %v1244_v59 }
  0xd4   : > { %673 = vmatprep.mubr.f32.mxu0 %v3537_v0  ;;  %2963 = vmatprep.mubr.msk.f32.mxu1 %vm409_vm2, %v438_v62 }
  0xd7   : > { %2786 = vmatmul.mubr.msk.f32.gmra.mrb[24].mxu0 %vm409_vm2, %v438_v62  ;;  %2964 = vmatmul.mubr.msk.f32.gmra.mrb[24].mxu1 %vm409_vm2, %v439_v63 }
  0xd8   : > { %679 = vmatprep.mubr.f32.mxu0 %v3537_v0  ;;  %2966 = vmatprep.mubr.msk.f32.mxu1 %vm409_vm2, %v440_v1 }
  0xdb   : > { %2787 = vmatmul.mubr.msk.f32.gmra.mrb[26].mxu0 %vm409_vm2, %v439_v63  ;;  %2967 = vmatmul.mubr.msk.f32.gmra.mrb[26].mxu1 %vm409_vm2, %v441_v2 }
  0xdc   : > { %685 = vmatprep.mubr.f32.mxu0 %v3537_v0  ;;  %2969 = vmatprep.mubr.msk.f32.mxu1 %vm409_vm2, %v442_v3 }
  0xdf   : > { %2788 = vmatmul.mubr.msk.f32.gmra.mrb[28].mxu0 %vm409_vm2, %v440_v1  ;;  %2970 = vmatmul.mubr.msk.f32.gmra.mrb[28].mxu1 %vm409_vm2, %v443_v4 }
  0xe0   : > { %690 = vmatprep.mubr.f32.mxu0 %v3537_v0  ;;  %2972 = vmatprep.mubr.msk.f32.mxu1 %vm409_vm2, %v3893_v32  ;;  %v3141_v32 = vpack.c.bf16 %v1228_v30, %v1225_v29 }
  0xe2   : > { %3142 = vmatprep.subr.bf16.mxu1 %v3141_v32 }
  0xe3   : > { %2789 = vmatmul.mubr.msk.f32.gmra.mrb[30].mxu0 %vm409_vm2, %v441_v2  ;;  %2973 = vmatmul.mubr.msk.f32.gmra.mrb[30].mxu1 %vm409_vm2, %v3899_v39  ;;  %v1234_v39 = vld [vmem:[#allocation10 + $0x110] sm:$0xff] }
  0xe4   : > { %696 = vmatprep.mubr.f32.mxu0 %v3537_v0  ;;  %2975 = vmatprep.mubr.msk.f32.mxu1 %vm409_vm2, %v3908_v43  ;;  %v3145_v40 = vpack.c.bf16 %v1234_v39, %v1231_v38  ;;  %v3147_v43 = vpack.c.bf16 %v1233_v42, %v1230_v41 }
  0xe5   : > { %3144 = vmatpush1.bf16.msra.mxu1 %v3143_v34 }
  0xe6   : > { %3146 = vmatprep.subr.bf16.mxu1 %v3145_v40 }
  0xe7   : > { %2790 = vmatmul.mubr.msk.f32.gmra.mrb[32].mxu0 %vm409_vm2, %v442_v3  ;;  %2976 = vmatmul.mubr.msk.f32.gmra.mrb[32].mxu1 %vm409_vm2, %v3916_v48  ;;  %v1239_v48 = vld [vmem:[#allocation10 + $0x138] sm:$0xff] }
  0xe8   : > { %702 = vmatprep.mubr.f32.mxu0 %v3537_v0  ;;  %2978 = vmatprep.mubr.msk.f32.mxu1 %vm409_vm2, %v3923_v50  ;;  %v3151_v49 = vpack.c.bf16 %v1239_v48, %v1236_v47  ;;  %v1238_v50 = vld [vmem:[#allocation10 + $0x130] sm:$0xff] }
  0xe9   : > { %3148 = vmatpush1.bf16.msra.mxu1 %v3147_v43  ;;  %v3181_v53 = vpack.c.bf16 %v1241_v51, %v1238_v50 }
  0xea   : > { %3150 = vmatprep.subr.bf16.mxu1 %v3149_v46 }
  0xeb   : > { %2791 = vmatmul.mubr.msk.f32.gmra.mrb[34].mxu0 %vm409_vm2, %v443_v4  ;;  %2979 = vmatmul.mubr.msk.f32.gmra.mrb[34].mxu1 %vm409_vm2, %v3930_v52  ;;  %v1243_v52 = vld [vmem:[#allocation10 + $0x158] sm:$0xff] }
  0xec   : > { %1312 = vmatprep.mubr.f32.mxu1 %v3537_v0  ;;  %v3153_v57 = vpack.c.bf16 %v1246_v54, %v1243_v52  ;;  %3182 = vmatprep.subr.bf16.mxu0 %v3181_v53 }
  0xed   : > { %3152 = vmatpush1.bf16.msra.mxu1 %v3151_v49  ;;  %3184 = vmatpush3.bf16.msra.mxu0 %v3181_v53 }
  0xee   : > { %3154 = vmatprep.subr.bf16.mxu1 %v3153_v57  ;;  %3186 = vmatprep.subr.bf16.mxu0 %v3185_v61 }
  0xf1   : > { %3156 = vmatpush1.bf16.msra.mxu1 %v3155_v58  ;;  %3188 = vmatpush3.bf16.msra.mxu0 %v3185_v61 }
  0xf2   : > { %3190 = vmatprep.subr.bf16.mxu0 %v3189_v17  ;;  %3222 = vmatprep.subr.bf16.mxu1 %v3994_v24 }
 0x17a   : > { %v709_v62 = vpop.f32.mrb[0].mxu1  ;;  %v607_v63 = vpop.f32.mrb[0].mxu0 }
 0x17b   : > { %v711_v1 = vpop.f32.mrb[1].mxu1  ;;  %v609_v2 = vpop.f32.mrb[1].mxu0 }
 0x17c   : > { %v952_v4 = vrot.slane %v609_v2, 1  ;;  %v982_v8 = vrot.slane %v711_v1, 1  ;;  %v4013_v1 = vld [vmem:[%s4320_s2] ss:$0 sm:$0xff] }
 0x17e   : > { %v715_v3 = vpop.f32.mrb[2].mxu1  ;;  %v613_v5 = vpop.f32.mrb[2].mxu0 }
 0x17f   : > { %v717_v6 = vpop.f32.mrb[3].mxu1  ;;  %v615_v7 = vpop.f32.mrb[3].mxu0 }
 0x180   : > { %v983_v9 = vrot.slane %v717_v6, 1  ;;  %v953_v10 = vrot.slane %v615_v7, 1 }
 0x182   : > { %v984_v13 = vsel %vm951_vm4, %v982_v8, %v983_v9  ;;  %v721_v14 = vpop.f32.mrb[4].mxu1  ;;  %v954_v15 = vsel %vm951_vm4, %v952_v4, %v953_v10  ;;  %v619_v16 = vpop.f32.mrb[4].mxu0 }
 0x183   : > { %v3992_v20 = vadd.f32 %v984_v13, %v709_v62  ;;  %v722_v21 = vpop.f32.mrb[5].mxu1  ;;  %v1008_v22 = vadd.f32 %v954_v15, %v607_v63  ;;  %v620_v23 = vpop.f32.mrb[5].mxu0 }
 0x184   : > { %v985_v25 = vrot.slane %v722_v21, 1  ;;  %v955_v26 = vrot.slane %v620_v23, 1 }
 0x186   : > { %v986_v27 = vsel %vm951_vm4, %v983_v9, %v985_v25  ;;  %v726_v28 = vpop.f32.mrb[6].mxu1  ;;  %v956_v29 = vsel %vm951_vm4, %v953_v10, %v955_v26  ;;  %v624_v30 = vpop.f32.mrb[6].mxu0 }
 0x187   : > { %v3999_v31 = vadd.f32 %v986_v27, %v715_v3  ;;  %v728_v32 = vpop.f32.mrb[7].mxu1  ;;  %v1009_v33 = vadd.f32 %v956_v29, %v613_v5  ;;  %v626_v34 = vpop.f32.mrb[7].mxu0 }
 0x188   : > { %v957_v36 = vrot.slane %v626_v34, 1  ;;  %v987_v40 = vrot.slane %v728_v32, 1 }
 0x18a   : > { %v732_v35 = vpop.f32.mrb[8].mxu1  ;;  %v630_v37 = vpop.f32.mrb[8].mxu0 }
 0x18b   : > { %v734_v38 = vpop.f32.mrb[9].mxu1  ;;  %v632_v39 = vpop.f32.mrb[9].mxu0 }
 0x18c   : > { %v988_v41 = vrot.slane %v734_v38, 1  ;;  %v958_v42 = vrot.slane %v632_v39, 1 }
 0x18e   : > { %v989_v43 = vsel %vm951_vm4, %v987_v40, %v988_v41  ;;  %v738_v44 = vpop.f32.mrb[10].mxu1  ;;  %v959_v45 = vsel %vm951_vm4, %v957_v36, %v958_v42  ;;  %v636_v46 = vpop.f32.mrb[10].mxu0 }
 0x18f   : > { %v4003_v47 = vadd.f32 %v989_v43, %v726_v28  ;;  %v739_v48 = vpop.f32.mrb[11].mxu1  ;;  %v1010_v49 = vadd.f32 %v959_v45, %v624_v30  ;;  %v637_v50 = vpop.f32.mrb[11].mxu0 }
 0x190   : > { %v990_v51 = vrot.slane %v739_v48, 1  ;;  %v960_v52 = vrot.slane %v637_v50, 1 }
 0x192   : > { %v991_v53 = vsel %vm951_vm4, %v988_v41, %v990_v51  ;;  %v2947_v54 = vpop.f32.mrb[12].mxu1  ;;  %v961_v55 = vsel %vm951_vm4, %v958_v42, %v960_v52  ;;  %v641_v56 = vpop.f32.mrb[12].mxu0  ;;  %v1913_v41 = vld [vmem:[#allocation11 + $0x40] sm:$0xff]  ;;  %v1916_v42 = vld [vmem:[#allocation11 + $0x58] sm:$0xff] }
 0x193   : > { %v4007_v57 = vadd.f32 %v991_v53, %v732_v35  ;;  %v1050_v58 = vrot.slane %v2947_v54, 2  ;;  %v808_v59 = vpop.f32.mrb[13].mxu1  ;;  %v1011_v60 = vadd.f32 %v961_v55, %v630_v37  ;;  %v643_v61 = vpop.f32.mrb[13].mxu0  ;;  %v1905_v55 = vld [vmem:[#allocation11] sm:$0xff] }
 0x194   : > { %v1049_v62 = vrot.slane %v808_v59, 2  ;;  %v962_v3 = vrot.slane %v643_v61, 1 }
 0x196   : > { %v1051_v63 = vsel %vm1048_vm5, %v1049_v62, %v1050_v58  ;;  %v2950_v2 = vpop.f32.mrb[14].mxu1  ;;  %v647_v4 = vpop.f32.mrb[14].mxu0 }
 0x197   : > { %v1105_v5 = vadd.f32 %v1051_v63, %v1008_v22  ;;  %v818_v6 = vpop.f32.mrb[15].mxu1  ;;  %v649_v7 = vpop.f32.mrb[15].mxu0  ;;  %v1054_v23 = vrot.slane %v2950_v2, 2  ;;  %v1912_v63 = vld [vmem:[#allocation11 + $0x38] sm:$0xff]  ;;  %v1915_v2 = vld [vmem:[#allocation11 + $0x50] sm:$0xff] }
 0x198   : > { %v1052_v8 = vrot.slane %v818_v6, 2  ;;  %v963_v9 = vrot.slane %v649_v7, 1 }
 0x199   : > { %v1128_v10 = vadd.f32 %v4013_v1, %v1105_v5 }
 0x19a   : > { %v1053_v11 = vsel %vm1048_vm5, %v1050_v58, %v1052_v8  ;;  %v2953_v12 = vpop.f32.mrb[16].mxu1  ;;  %v964_v13 = vsel %vm951_vm4, %v962_v3, %v963_v9  ;;  %v653_v14 = vpop.f32.mrb[16].mxu0  ;;  %v3225_v58 = vpack.c.bf16 %v1916_v42, %v1913_v41 }
 0x19b   : > { %v1144_v15 = vmax.f32 %v1128_v10, 0.0  ;;  %v1106_v16 = vadd.f32 %v1053_v11, %v1009_v33  ;;  %v1057_v17 = vrot.slane %v2953_v12, 2  ;;  %v828_v18 = vpop.f32.mrb[17].mxu1  ;;  %v1012_v19 = vadd.f32 %v964_v13, %v641_v56  ;;  %v654_v21 = vpop.f32.mrb[17].mxu0  ;;  %v1908_v56 = vld [vmem:[#allocation11 + $0x18] sm:$0xff]  ;;  %v1914_v10 = vld [vmem:[#allocation11 + $0x48] sm:$0xff] }
 0x19c   : > { %v1055_v22 = vrot.slane %v828_v18, 2  ;;  %v965_v25 = vrot.slane %v654_v21, 1  ;;  %v3191_v8 = vpack.c.bf16 %v1908_v56, %v1905_v55 }
 0x19d   : > { %1160 = vst [vmem:[#allocation3 + $0x1] sm:$0xff] %v1144_v15  ;;  %v1129_v26 = vadd.f32 %v4013_v1, %v1106_v16 }
 0x19e   : > { %v1056_v27 = vsel %vm1048_vm5, %v1054_v23, %v1055_v22  ;;  %v1058_v28 = vsel %vm1048_vm5, %v1055_v22, %v1057_v17  ;;  %v2956_v29 = vpop.f32.mrb[18].mxu1  ;;  %v966_v30 = vsel %vm951_vm4, %v963_v9, %v965_v25  ;;  %v658_v32 = vpop.f32.mrb[18].mxu0  ;;  %v1911_v9 = vld [vmem:[#allocation11 + $0x30] sm:$0xff]  ;;  %v3193_v23 = vpack.c.bf16 %v1915_v2, %v1912_v63  ;;  %v1918_v25 = vld [vmem:[#allocation11 + $0x68] sm:$0xff] }
 0x19f   : > { %v1145_v34 = vmax.f32 %v1129_v26, 0.0  ;;  %v1107_v33 = vadd.f32 %v1056_v27, %v1010_v49  ;;  %v1108_v35 = vadd.f32 %v1058_v28, %v1011_v60  ;;  %v1060_v36 = vrot.slane %v2956_v29, 2  ;;  %v838_v37 = vpop.f32.mrb[19].mxu1  ;;  %v660_v38 = vpop.f32.mrb[19].mxu0  ;;  %v1921_v26 = vld [vmem:[#allocation11 + $0x80] sm:$0xff] }
 0x1a0   : > { %v1013_v39 = vadd.f32 %v966_v30, %v647_v4  ;;  %v1059_v40 = vrot.slane %v838_v37, 2  ;;  %v967_v48 = vrot.slane %v660_v38, 1 }
 0x1a1   : > { %1161 = vst [vmem:[#allocation3 + $0x9] sm:$0xff] %v1145_v34  ;;  %v1130_v43 = vadd.f32 %v4013_v1, %v1107_v33  ;;  %v1131_v44 = vadd.f32 %v4013_v1, %v1108_v35 }
 0x1a2   : > { %v1061_v45 = vsel %vm1048_vm5, %v1059_v40, %v1060_v36  ;;  %v2959_v46 = vpop.f32.mrb[20].mxu1  ;;  %v664_v50 = vpop.f32.mrb[20].mxu0 }
 0x1a3   : > { %v1146_v51 = vmax.f32 %v1130_v43, 0.0  ;;  %v1147_v49 = vmax.f32 %v1131_v44, 0.0  ;;  %v1109_v52 = vadd.f32 %v1061_v45, %v1012_v19  ;;  %v848_v53 = vpop.f32.mrb[21].mxu1  ;;  %v666_v54 = vpop.f32.mrb[21].mxu0  ;;  %v1064_v3 = vrot.slane %v2959_v46, 2  ;;  %v1920_v44 = vld [vmem:[#allocation11 + $0x78] sm:$0xff] }
 0x1a4   : > { %v1062_v59 = vrot.slane %v848_v53, 2  ;;  %v968_v60 = vrot.slane %v666_v54, 1  ;;  %v1176_v61 = vld [vmem:[#allocation3] sm:$0xff]  ;;  %v3197_v43 = vpack.c.bf16 %v1921_v26, %v1918_v25 }
 0x1a5   : > { %1162 = vst [vmem:[#allocation3 + $0x19] sm:$0xff] %v1146_v51  ;;  %1163 = vst [vmem:[#allocation3 + $0x21] sm:$0xff] %v1147_v49  ;;  %v1132_v62 = vadd.f32 %v4013_v1, %v1109_v52  ;;  %1313 = vmatmul.mubr.f32.vlgmr.msra.gmra.mrb[36].mxu1 %v1176_v61  ;;  %3013 = vmatprep.mubr.f32.mxu0 %v1176_v61 }
 0x1a6   : > { %v1063_v4 = vsel %vm1048_vm5, %v1060_v36, %v1062_v59  ;;  %v969_v5 = vsel %vm951_vm4, %v967_v48, %v968_v60  ;;  %v2962_v6 = vpop.f32.mrb[22].mxu1  ;;  %1318 = vmatprep.mubr.f32.mxu1 %v3537_v0  ;;  %v670_v7 = vpop.f32.mrb[22].mxu0  ;;  %3224 = vmatpush3.bf16.msra.mxu1 %v3994_v24  ;;  %v3195_v24 = vpack.c.bf16 %v1914_v10, %v1911_v9  ;;  %v1924_v48 = vld [vmem:[#allocation11 + $0x98] sm:$0xff] }
 0x1a7   : > { %v1148_v11 = vmax.f32 %v1132_v62, 0.0  ;;  %v1110_v12 = vadd.f32 %v1063_v4, %v1013_v39  ;;  %v1014_v13 = vadd.f32 %v969_v5, %v658_v32  ;;  %v1067_v14 = vrot.slane %v2962_v6, 2  ;;  %v858_v15 = vpop.f32.mrb[23].mxu1  ;;  %v671_v16 = vpop.f32.mrb[23].mxu0  ;;  %3226 = vmatprep.subr.bf16.mxu1 %v3225_v58  ;;  %v1917_v39 = vld [vmem:[#allocation11 + $0x60] sm:$0xff]  ;;  %v1926_v4 = vld [vmem:[#allocation11 + $0xa8] sm:$0xff] }
 0x1a8   : > { %v1065_v17 = vrot.slane %v858_v15, 2  ;;  %v1177_v18 = vld [vmem:[#allocation3 + $0x8] sm:$0xff]  ;;  %v970_v19 = vrot.slane %v671_v16, 1  ;;  %v1178_v21 = vld [vmem:[#allocation3 + $0x10] sm:$0xff]  ;;  %v3199_v59 = vpack.c.bf16 %v1920_v44, %v1917_v39 }
 0x1a9   : > { %1164 = vst [vmem:[#allocation3 + $0x31] sm:$0xff] %v1148_v11  ;;  %v1133_v22 = vadd.f32 %v4013_v1, %v1110_v12  ;;  %1319 = vmatmul.mubr.f32.gmra.mrb[38].mxu1 %v1177_v18  ;;  %3014 = vmatmul.mubr.f32.vlgmr.msra.gmra.mrb[36].mxu0 %v1177_v18 }
 0x1aa   : > { %v1066_v27 = vsel %vm1048_vm5, %v1064_v3, %v1065_v17  ;;  %v1068_v28 = vsel %vm1048_vm5, %v1065_v17, %v1067_v14  ;;  %v971_v29 = vsel %vm951_vm4, %v968_v60, %v970_v19  ;;  %3016 = vmatprep.mubr.f32.mxu0 %v1178_v21  ;;  %1324 = vmatprep.mubr.f32.mxu1 %v3537_v0  ;;  %v2965_v30 = vpop.f32.mrb[24].mxu1  ;;  %v675_v32 = vpop.f32.mrb[24].mxu0  ;;  %v1923_v60 = vld [vmem:[#allocation11 + $0x90] sm:$0xff] }
 0x1ab   : > { %v1149_v34 = vmax.f32 %v1133_v22, 0.0  ;;  %v1111_v33 = vadd.f32 %v1066_v27, %v1014_v13  ;;  %v1015_v35 = vadd.f32 %v971_v29, %v664_v50  ;;  %v1070_v36 = vrot.slane %v2965_v30, 2  ;;  %v868_v37 = vpop.f32.mrb[25].mxu1  ;;  %v677_v38 = vpop.f32.mrb[25].mxu0  ;;  %3192 = vmatpush1.bf16.msra.mxu0 %v3191_v8  ;;  %3228 = vmatpush3.bf16.msra.mxu1 %v3225_v58  ;;  %v1927_v50 = vld [vmem:[#allocation11 + $0xb0] sm:$0xff] }
 0x1ac   : > { %v1179_v40 = vld [vmem:[#allocation3 + $0x18] sm:$0xff]  ;;  %v1180_v41 = vld [vmem:[#allocation3 + $0x20] sm:$0xff]  ;;  %v1069_v42 = vrot.slane %v868_v37, 2  ;;  %3194 = vmatprep.subr.bf16.mxu0 %v3193_v23  ;;  %v972_v52 = vrot.slane %v677_v38, 1  ;;  %v1181_v61 = vld [vmem:[#allocation3 + $0x28] sm:$0xff]  ;;  %v3201_v3 = vpack.c.bf16 %v1927_v50, %v1924_v48  ;;  %v3203_v15 = vpack.c.bf16 %v1926_v4, %v1923_v60 }
 0x1ad   : > { %1165 = vst [vmem:[#allocation3 + $0x39] sm:$0xff] %v1149_v34  ;;  %v1134_v45 = vadd.f32 %v4013_v1, %v1111_v33  ;;  %v1112_v46 = vadd.f32 %v1068_v28, %v1015_v35  ;;  %1325 = vmatmul.mubr.f32.gmra.mrb[40].mxu1 %v1178_v21  ;;  %3017 = vmatmul.mubr.f32.gmra.mrb[38].mxu0 %v1179_v40 }
 0x1ae   : > { %3019 = vmatprep.mubr.f32.mxu0 %v1180_v41  ;;  %1329 = vmatprep.mubr.f32.mxu1 %v3537_v0  ;;  %v1071_v51 = vsel %vm1048_vm5, %v1069_v42, %v1070_v36  ;;  %v2968_v49 = vpop.f32.mrb[26].mxu1  ;;  %v681_v53 = vpop.f32.mrb[26].mxu0 }
 0x1af   : > { %v1150_v54 = vmax.f32 %v1134_v45, 0.0  ;;  %v1135_v55 = vadd.f32 %v4013_v1, %v1112_v46  ;;  %v878_v56 = vpop.f32.mrb[27].mxu1  ;;  %v683_v58 = vpop.f32.mrb[27].mxu0  ;;  %3196 = vmatpush1.bf16.msra.mxu0 %v3195_v24  ;;  %v1074_v6 = vrot.slane %v2968_v49, 2 }
 0x1b0   : > { %v1072_v62 = vrot.slane %v878_v56, 2  ;;  %v4039_v63 = vld [vmem:[#allocation3 + $0x30] sm:$0xff]  ;;  %v973_v2 = vrot.slane %v683_v58, 1  ;;  %3198 = vmatprep.subr.bf16.mxu0 %v3197_v43 }
 0x1b1   : > { %1166 = vst [vmem:[#allocation3 + $0x49] sm:$0xff] %v1150_v54  ;;  %v1151_v5 = vmax.f32 %v1135_v55, 0.0  ;;  %1330 = vmatmul.mubr.f32.gmra.mrb[42].mxu1 %v1179_v40  ;;  %3020 = vmatmul.mubr.f32.gmra.mrb[40].mxu0 %v1181_v61 }
 0x1b2   : > { %v1073_v7 = vsel %vm1048_vm5, %v1070_v36, %v1072_v62  ;;  %v2971_v8 = vpop.f32.mrb[28].mxu1  ;;  %1335 = vmatprep.mubr.f32.mxu1 %v3537_v0  ;;  %3022 = vmatprep.mubr.f32.mxu0 %v4039_v63  ;;  %v974_v9 = vsel %vm951_vm4, %v972_v52, %v973_v2  ;;  %v687_v10 = vpop.f32.mrb[28].mxu0 }
 0x1b3   : > { %1167 = vst [vmem:[#allocation3 + $0x51] sm:$0xff] %v1151_v5  ;;  %v1077_v11 = vrot.slane %v2971_v8, 2  ;;  %v1016_v12 = vadd.f32 %v974_v9, %v675_v32  ;;  %v888_v13 = vpop.f32.mrb[29].mxu1  ;;  %v688_v14 = vpop.f32.mrb[29].mxu0  ;;  %3200 = vmatpush1.bf16.msra.mxu0 %v3199_v59 }
 0x1b4   : > { %v1075_v16 = vrot.slane %v888_v13, 2  ;;  %v4045_v17 = vld [vmem:[#allocation3 + $0x38] sm:$0xff]  ;;  %v975_v18 = vrot.slane %v688_v14, 1  ;;  %v4047_v19 = vld [vmem:[#allocation3 + $0x40] sm:$0xff]  ;;  %3202 = vmatprep.subr.bf16.mxu0 %v3201_v3 }
 0x1b5   : > { %v1113_v21 = vadd.f32 %v1071_v51, %v1016_v12  ;;  %1336 = vmatmul.mubr.f32.gmra.mrb[44].mxu1 %v1180_v41  ;;  %3023 = vmatmul.mubr.f32.gmra.mrb[42].mxu0 %v4045_v17 }
 0x1b6   : > { %v1076_v23 = vsel %vm1048_vm5, %v1074_v6, %v1075_v16  ;;  %v4052_v22 = vsel %vm1048_vm5, %v1075_v16, %v1077_v11  ;;  %v2974_v24 = vpop.f32.mrb[30].mxu1  ;;  %v976_v25 = vsel %vm951_vm4, %v973_v2, %v975_v18  ;;  %v692_v26 = vpop.f32.mrb[30].mxu0  ;;  %1341 = vmatprep.mubr.f32.mxu1 %v3537_v0  ;;  %3025 = vmatprep.mubr.f32.mxu0 %v4047_v19 }
 0x1b7   : > { %v1136_v27 = vadd.f32 %v4013_v1, %v1113_v21  ;;  %v1080_v28 = vrot.slane %v2974_v24, 2  ;;  %v1017_v29 = vadd.f32 %v976_v25, %v681_v53  ;;  %v898_v30 = vpop.f32.mrb[31].mxu1  ;;  %v694_v32 = vpop.f32.mrb[31].mxu0  ;;  %3204 = vmatpush1.bf16.msra.mxu0 %v3203_v15 }
 0x1b8   : > { %v1079_v34 = vrot.slane %v898_v30, 2  ;;  %v4058_v33 = vld [vmem:[#allocation3 + $0x48] sm:$0xff]  ;;  %v977_v38 = vrot.slane %v694_v32, 1  ;;  %v1930_v30 = vld [vmem:[#allocation11 + $0xc8] sm:$0xff] }
 0x1b9   : > { %v1152_v35 = vmax.f32 %v1136_v27, 0.0  ;;  %v1114_v36 = vadd.f32 %v1073_v7, %v1017_v29  ;;  %1342 = vmatmul.mubr.f32.gmra.mrb[46].mxu1 %v1181_v61  ;;  %3026 = vmatmul.mubr.f32.gmra.mrb[44].mxu0 %v4058_v33  ;;  %v1933_v32 = vld [vmem:[#allocation11 + $0xe0] sm:$0xff] }
 0x1ba   : > { %v1081_v37 = vsel %vm1048_vm5, %v1079_v34, %v1080_v28  ;;  %v698_v39 = vpop.f32.mrb[32].mxu0  ;;  %v2977_v40 = vpop.f32.mrb[32].mxu1  ;;  %1346 = vmatprep.mubr.f32.mxu1 %v3537_v0  ;;  %v4063_v41 = vld [vmem:[#allocation3 + $0x50] sm:$0xff]  ;;  %v4065_v42 = vld [vmem:[#allocation3 + $0x58] sm:$0xff]  ;;  %v1929_v34 = vld [vmem:[#allocation11 + $0xc0] sm:$0xff] }
 0x1bb   : > { %1168 = vst [vmem:[#allocation3 + $0x61] sm:$0xff] %v1152_v35  ;;  %v1137_v43 = vadd.f32 %v4013_v1, %v1114_v36  ;;  %v1117_v44 = vadd.f32 %v1081_v37, %v3992_v20  ;;  %v700_v45 = vpop.f32.mrb[33].mxu0  ;;  %v908_v46 = vpop.f32.mrb[33].mxu1  ;;  %3028 = vmatprep.mubr.f32.mxu0 %v4063_v41  ;;  %v1084_v52 = vrot.slane %v2977_v40, 2  ;;  %v1932_v35 = vld [vmem:[#allocation11 + $0xd8] sm:$0xff]  ;;  %v1919_v36 = vld [vmem:[#allocation11 + $0x70] sm:$0xff] }
 0x1bc   : > { %v978_v48 = vrot.slane %v700_v45, 1  ;;  %v1082_v50 = vrot.slane %v908_v46, 2  ;;  %v1922_v37 = vld [vmem:[#allocation11 + $0x88] sm:$0xff]  ;;  %v1925_v40 = vld [vmem:[#allocation11 + $0xa0] sm:$0xff]  ;;  %v1935_v46 = vld [vmem:[#allocation11 + $0xf0] sm:$0xff] }
 0x1bd   : > { %v1153_v51 = vmax.f32 %v1137_v43, 0.0  ;;  %v1140_v49 = vadd.f32 %v4013_v1, %v1117_v44  ;;  %1347 = vmatmul.mubr.f32.gmra.mrb[48].mxu1 %v4039_v63  ;;  %3029 = vmatmul.mubr.f32.gmra.mrb[46].mxu0 %v4065_v42  ;;  %v1936_v43 = vld [vmem:[#allocation11 + $0xf8] sm:$0xff]  ;;  %v1939_v44 = vld [vmem:[#allocation11 + $0x110] sm:$0xff] }
 0x1be   : > { %v979_v53 = vsel %vm951_vm4, %v977_v38, %v978_v48  ;;  %v1083_v54 = vsel %vm1048_vm5, %v1080_v28, %v1082_v50  ;;  %v704_v55 = vpop.f32.mrb[34].mxu0  ;;  %v2980_v20 = vpop.f32.mrb[34].mxu1  ;;  %1352 = vmatprep.mubr.f32.mxu1 %v3537_v0  ;;  %v3207_v38 = vpack.c.bf16 %v1932_v35, %v1929_v34  ;;  %v3209_v45 = vpack.c.bf16 %v1939_v44, %v1936_v43  ;;  %v1931_v50 = vld [vmem:[#allocation11 + $0xd0] sm:$0xff] }
 0x1bf   : > { %1169 = vst [vmem:[#allocation3 + $0x69] sm:$0xff] %v1153_v51  ;;  %v1156_v56 = vmax.f32 %v1140_v49, 0.0  ;;  %v1018_v58 = vadd.f32 %v979_v53, %v692_v26  ;;  %v1118_v59 = vadd.f32 %v1083_v54, %v3999_v31  ;;  %v1087_v60 = vrot.slane %v2980_v20, 2  ;;  %v705_v61 = vpop.f32.mrb[35].mxu0  ;;  %v918_v62 = vpop.f32.mrb[35].mxu1  ;;  %v1934_v49 = vld [vmem:[#allocation11 + $0xe8] sm:$0xff] }
 0x1c0   : > { %v980_v63 = vrot.slane %v705_v61, 1  ;;  %v1085_v2 = vrot.slane %v918_v62, 2  ;;  %v1942_v53 = vld [vmem:[#allocation11 + $0x128] sm:$0xff]  ;;  %v1945_v54 = vld [vmem:[#allocation11 + $0x140] sm:$0xff]  ;;  %v1948_v62 = vld [vmem:[#allocation11 + $0x158] sm:$0xff] }
 0x1c1   : > { %1172 = vst [vmem:[#allocation3 + $0x91] sm:$0xff] %v1156_v56  ;;  %v1115_v3 = vadd.f32 %v1076_v23, %v1018_v58  ;;  %v1141_v4 = vadd.f32 %v4013_v1, %v1118_v59  ;;  %1353 = vmatmul.mubr.f32.gmra.mrb[50].mxu1 %v4045_v17  ;;  %v1937_v55 = vld [vmem:[#allocation11 + $0x100] sm:$0xff]  ;;  %v3213_v20 = vpack.c.bf16 %v1945_v54, %v1942_v53  ;;  %v1944_v58 = vld [vmem:[#allocation11 + $0x138] sm:$0xff] }
 0x1c2   : > { %v981_v5 = vsel %vm951_vm4, %v978_v48, %v980_v63  ;;  %v1086_v6 = vsel %vm1048_vm5, %v1084_v52, %v1085_v2  ;;  %v1088_v7 = vsel %vm1048_vm5, %v1085_v2, %v1087_v60  ;;  %1358 = vmatprep.mubr.f32.mxu1 %v3537_v0  ;;  %v1188_v31 = vld [vmem:[#allocation3 + $0x60] sm:$0xff]  ;;  %v1938_v48 = vld [vmem:[#allocation11 + $0x108] sm:$0xff]  ;;  %v3237_v52 = vpack.c.bf16 %v1934_v49, %v1931_v50  ;;  %v1941_v56 = vld [vmem:[#allocation11 + $0x120] sm:$0xff] }
 0x1c3   : > { %v1138_v8 = vadd.f32 %v4013_v1, %v1115_v3  ;;  %v1157_v9 = vmax.f32 %v1141_v4, 0.0  ;;  %v1019_v10 = vadd.f32 %v981_v5, %v698_v39  ;;  %v1119_v11 = vadd.f32 %v1086_v6, %v4003_v47  ;;  %3031 = vmatprep.mubr.f32.mxu0 %v1188_v31  ;;  %v1940_v59 = vld [vmem:[#allocation11 + $0x118] sm:$0xff]  ;;  %v1951_v63 = vld [vmem:[#allocation11 + $0x170] sm:$0xff]  ;;  %v1950_v5 = vld [vmem:[#allocation11 + $0x168] sm:$0xff] }
 0x1c4   : > { %v1120_v12 = vadd.f32 %v1088_v7, %v4007_v57  ;;  %v3229_v39 = vpack.c.bf16 %v1922_v37, %v1919_v36  ;;  %v3211_v51 = vpack.c.bf16 %v1938_v48, %v1935_v46  ;;  %v3215_v60 = vpack.c.bf16 %v1944_v58, %v1941_v56  ;;  %v1943_v2 = vld [vmem:[#allocation11 + $0x130] sm:$0xff]  ;;  %v1946_v6 = vld [vmem:[#allocation11 + $0x148] sm:$0xff] }
 0x1c5   : > { %v1154_v13 = vmax.f32 %v1138_v8, 0.0  ;;  %1173 = vst [vmem:[#allocation3 + $0x99] sm:$0xff] %v1157_v9  ;;  %v1116_v14 = vadd.f32 %v4052_v22, %v1019_v10  ;;  %v1142_v15 = vadd.f32 %v4013_v1, %v1119_v11  ;;  %1359 = vmatmul.mubr.f32.gmra.mrb[52].mxu1 %v4047_v19  ;;  %v3241_v61 = vpack.c.bf16 %v1940_v59, %v1937_v55  ;;  %v1947_v4 = vld [vmem:[#allocation11 + $0x150] sm:$0xff]  ;;  %v1949_v8 = vld [vmem:[#allocation11 + $0x160] sm:$0xff]  ;;  %v1952_v9 = vld [vmem:[#allocation11 + $0x178] sm:$0xff] }
 0x1c6   : > { %v1143_v16 = vadd.f32 %v4013_v1, %v1120_v12  ;;  %1363 = vmatprep.mubr.f32.mxu1 %v3537_v0  ;;  %v1189_v17 = vld [vmem:[#allocation3 + $0x68] sm:$0xff]  ;;  %v1190_v18 = vld [vmem:[#allocation3 + $0x70] sm:$0xff]  ;;  %3230 = vmatprep.subr.bf16.mxu1 %v3229_v39  ;;  %v3217_v3 = vpack.c.bf16 %v1951_v63, %v1948_v62  ;;  %v3219_v7 = vpack.c.bf16 %v1950_v5, %v1947_v4 }
 0x1c7   : > { %1170 = vst [vmem:[#allocation3 + $0x79] sm:$0xff] %v1154_v13  ;;  %v1139_v47 = vadd.f32 %v4013_v1, %v1116_v14  ;;  %v1158_v21 = vmax.f32 %v1142_v15, 0.0  ;;  %3032 = vmatmul.mubr.f32.gmra.mrb[48].mxu0 %v1189_v17  ;;  %3232 = vmatpush3.bf16.msra.mxu1 %v3229_v39  ;;  %v3249_v10 = vpack.c.bf16 %v1952_v9, %v1949_v8 }
 0x1c8   : > { %v1159_v57 = vmax.f32 %v1143_v16, 0.0  ;;  %3034 = vmatprep.mubr.f32.mxu0 %v1190_v18  ;;  %v1194_v24 = vld [vmem:[#allocation3 + $0x90] sm:$0xff] }
 0x1c9   : > { %v1155_v23 = vmax.f32 %v1139_v47, 0.0  ;;  %1174 = vst [vmem:[#allocation3 + $0xa9] sm:$0xff] %v1158_v21  ;;  %1364 = vmatmul.mubr.f32.gmra.mrb[54].mxu1 %v4058_v33  ;;  %v3205_v33 = vpack.c.bf16 %v1933_v32, %v1930_v30 }
 0x1ca   : > { %1175 = vst [vmem:[#allocation3 + $0xb1] sm:$0xff] %v1159_v57  ;;  %1369 = vmatprep.mubr.f32.mxu1 %v3537_v0 }
 0x1cb   : > { %1171 = vst [vmem:[#allocation3 + $0x81] sm:$0xff] %v1155_v23  ;;  %3206 = vmatprep.subr.bf16.mxu0 %v3205_v33 }
 0x1cc   : > { %v1195_v25 = vld [vmem:[#allocation3 + $0x98] sm:$0xff]  ;;  %v1196_v26 = vld [vmem:[#allocation3 + $0xa0] sm:$0xff]  ;;  %3208 = vmatpush1.bf16.msra.mxu0 %v3207_v38 }
 0x1cd   : > { %1370 = vmatmul.mubr.f32.gmra.mrb[56].mxu1 %v4063_v41  ;;  %v1928_v41 = vld [vmem:[#allocation11 + $0xb8] sm:$0xff]  ;;  %3210 = vmatprep.subr.bf16.mxu0 %v3209_v45 }
 0x1ce   : > { %v1191_v19 = vld [vmem:[#allocation3 + $0x78] sm:$0xff]  ;;  %1375 = vmatprep.mubr.f32.mxu1 %v3537_v0 }
 0x1cf   : > { %3035 = vmatmul.mubr.f32.gmra.mrb[50].mxu0 %v1191_v19 }
 0x1d0   : > { %v1197_v27 = vld [vmem:[#allocation3 + $0xa8] sm:$0xff]  ;;  %3212 = vmatpush1.bf16.msra.mxu0 %v3211_v51 }
 0x1d1   : > { %1376 = vmatmul.mubr.f32.gmra.mrb[58].mxu1 %v4065_v42  ;;  %v1198_v28 = vld [vmem:[#allocation3 + $0xb0] sm:$0xff]  ;;  %v1199_v29 = vld [vmem:[#allocation3 + $0xb8] sm:$0xff]  ;;  %v3233_v42 = vpack.c.bf16 %v1928_v41, %v1925_v40  ;;  %3214 = vmatprep.subr.bf16.mxu0 %v3213_v20 }
 0x1d2   : > { %v1192_v1 = vld [vmem:[#allocation3 + $0x80] sm:$0xff]  ;;  %1380 = vmatprep.mubr.f32.mxu1 %v3537_v0  ;;  %v1193_v22 = vld [vmem:[#allocation3 + $0x88] sm:$0xff] }
 0x1d3   : > { %3037 = vmatprep.mubr.f32.mxu0 %v1192_v1  ;;  %3234 = vmatprep.subr.bf16.mxu1 %v3233_v42 }
 0x1d4   : > { %3038 = vmatmul.mubr.f32.gmra.mrb[52].mxu0 %v1193_v22  ;;  %3236 = vmatpush3.bf16.msra.mxu1 %v3233_v42 }
 0x1d5   : > { %1381 = vmatmul.mubr.f32.gmra.mrb[60].mxu1 %v1188_v31  ;;  %3040 = vmatprep.mubr.f32.mxu0 %v1194_v24  ;;  %v3245_v31 = vpack.c.bf16 %v1946_v6, %v1943_v2 }
 0x1d6   : > { %1386 = vmatprep.mubr.f32.mxu1 %v3537_v0  ;;  %3238 = vmatprep.subr.bf16.mxu1 %v3237_v52 }
 0x1d7   : > { %3216 = vmatpush1.bf16.msra.mxu0 %v3215_v60 }
 0x1d8   : > { %3041 = vmatmul.mubr.f32.gmra.mrb[54].mxu0 %v1195_v25  ;;  %3240 = vmatpush3.bf16.msra.mxu1 %v3237_v52 }
 0x1d9   : > { %1387 = vmatmul.mubr.f32.gmra.mrb[62].mxu1 %v1189_v17  ;;  %3043 = vmatprep.mubr.f32.mxu0 %v1196_v26 }
 0x1da   : > { %1392 = vmatprep.mubr.f32.mxu1 %v3537_v0  ;;  %3242 = vmatprep.subr.bf16.mxu1 %v3241_v61 }
 0x1db   : > { %3218 = vmatprep.subr.bf16.mxu0 %v3217_v3 }
 0x1dc   : > { %3044 = vmatmul.mubr.f32.gmra.mrb[56].mxu0 %v1197_v27  ;;  %3244 = vmatpush3.bf16.msra.mxu1 %v3241_v61 }
 0x1dd   : > { %1393 = vmatmul.mubr.f32.gmra.mrb[64].mxu1 %v1190_v18  ;;  %3046 = vmatprep.mubr.f32.mxu0 %v1198_v28 }
 0x1de   : > { %1397 = vmatprep.mubr.f32.mxu1 %v3537_v0  ;;  %3220 = vmatpush1.bf16.msra.mxu0 %v3219_v7 }
 0x1df   : > { %3246 = vmatprep.subr.bf16.mxu1 %v3245_v31 }
 0x1e0   : > { %3047 = vmatmul.mubr.f32.gmra.mrb[58].mxu0 %v1199_v29  ;;  %3248 = vmatpush3.bf16.msra.mxu1 %v3245_v31 }
 0x1e1   : > { %1398 = vmatmul.mubr.f32.gmra.mrb[66].mxu1 %v1191_v19  ;;  %2017 = vmatprep.mubr.f32.mxu0 %v3537_v0 }
 0x1e2   : > { %1403 = vmatprep.mubr.f32.mxu1 %v3537_v0  ;;  %3250 = vmatprep.subr.bf16.mxu1 %v3249_v10 }
 0x1e4   : > { %3252 = vmatpush3.bf16.msra.mxu1 %v3249_v10 }
 0x1e5   : > { %1404 = vmatmul.mubr.f32.gmra.mrb[68].mxu1 %v1192_v1 }
 0x1e6   : > { %1409 = vmatprep.mubr.f32.mxu1 %v3537_v0 }
 0x1e9   : > { %1410 = vmatmul.mubr.f32.gmra.mrb[70].mxu1 %v1193_v22 }
 0x1ea   : > { %1414 = vmatprep.mubr.f32.mxu1 %v3537_v0 }
 0x1ed   : > { %1415 = vmatmul.mubr.f32.gmra.mrb[72].mxu1 %v1194_v24 }
 0x1ee   : > { %1420 = vmatprep.mubr.f32.mxu1 %v3537_v0 }
 0x1f1   : > { %1421 = vmatmul.mubr.f32.gmra.mrb[74].mxu1 %v1195_v25 }
 0x1f2   : > { %1426 = vmatprep.mubr.f32.mxu1 %v3537_v0 }
 0x1f5   : > { %1427 = vmatmul.mubr.f32.gmra.mrb[76].mxu1 %v1196_v26  ;;  %v4115_v26 = vld [vmem:[%s4322_s4] ss:$0 sm:$0xff] }
 0x1f6   : > { %1431 = vmatprep.mubr.f32.mxu1 %v3537_v0 }
 0x1f9   : > { %1432 = vmatmul.mubr.f32.gmra.mrb[78].mxu1 %v1197_v27 }
 0x1fa   : > { %1437 = vmatprep.mubr.f32.mxu1 %v3537_v0 }
 0x1fd   : > { %1438 = vmatmul.mubr.f32.gmra.mrb[80].mxu1 %v1198_v28 }
 0x1fe   : > { %1443 = vmatprep.mubr.f32.mxu1 %v3537_v0 }
 0x201   : > { %1444 = vmatmul.mubr.f32.gmra.mrb[82].mxu1 %v1199_v29 }
 0x278   : > { %v1314_v11 = vpop.f32.mrb[36].mxu1 }
 0x279   : > { %v1316_v12 = vpop.f32.mrb[37].mxu1 }
 0x27a   : > { %v1658_v18 = vrot.slane %v1316_v12, 1 }
 0x27c   : > { %v1320_v13 = vpop.f32.mrb[38].mxu1  ;;  %v3015_v14 = vpop.f32.mrb[36].mxu0 }
 0x27d   : > { %v1755_v15 = vrot.slane %v3015_v14, 2  ;;  %v1322_v16 = vpop.f32.mrb[39].mxu1  ;;  %v1515_v17 = vpop.f32.mrb[37].mxu0 }
 0x27e   : > { %v1659_v47 = vrot.slane %v1322_v16, 1  ;;  %v1754_v21 = vrot.slane %v1515_v17, 2 }
 0x280   : > { %v1660_v57 = vsel %vm951_vm4, %v1658_v18, %v1659_v47  ;;  %v1756_v23 = vsel %vm1048_vm5, %v1754_v21, %v1755_v15  ;;  %v1326_v19 = vpop.f32.mrb[40].mxu1  ;;  %v3018_v1 = vpop.f32.mrb[38].mxu0 }
 0x281   : > { %v1714_v22 = vadd.f32 %v1660_v57, %v1314_v11  ;;  %v1327_v24 = vpop.f32.mrb[41].mxu1  ;;  %v1525_v25 = vpop.f32.mrb[39].mxu0  ;;  %v1759_v40 = vrot.slane %v3018_v1, 2 }
 0x282   : > { %v1661_v27 = vrot.slane %v1327_v24, 1  ;;  %v1757_v28 = vrot.slane %v1525_v25, 2 }
 0x283   : > { %v1810_v29 = vadd.f32 %v1756_v23, %v1714_v22 }
 0x284   : > { %v1662_v30 = vsel %vm951_vm4, %v1659_v47, %v1661_v27  ;;  %v1758_v32 = vsel %vm1048_vm5, %v1755_v15, %v1757_v28  ;;  %v1331_v34 = vpop.f32.mrb[42].mxu1  ;;  %v3021_v33 = vpop.f32.mrb[40].mxu0 }
 0x285   : > { %v1833_v35 = vadd.f32 %v4115_v26, %v1810_v29  ;;  %v1715_v36 = vadd.f32 %v1662_v30, %v1320_v13  ;;  %v1762_v37 = vrot.slane %v3021_v33, 2  ;;  %v1333_v38 = vpop.f32.mrb[43].mxu1  ;;  %v1535_v39 = vpop.f32.mrb[41].mxu0 }
 0x286   : > { %v1760_v41 = vrot.slane %v1535_v39, 2  ;;  %v1663_v53 = vrot.slane %v1333_v38, 1 }
 0x287   : > { %v1849_v42 = vmax.f32 %v1833_v35, 0.0  ;;  %v1811_v43 = vadd.f32 %v1758_v32, %v1715_v36 }
 0x288   : > { %v1761_v44 = vsel %vm1048_vm5, %v1759_v40, %v1760_v41  ;;  %v1763_v45 = vsel %vm1048_vm5, %v1760_v41, %v1762_v37  ;;  %v1337_v46 = vpop.f32.mrb[44].mxu1  ;;  %v3024_v48 = vpop.f32.mrb[42].mxu0 }
 0x289   : > { %1865 = vst [vmem:[#allocation4 + $0x1] sm:$0xff] %v1849_v42  ;;  %v1834_v50 = vadd.f32 %v4115_v26, %v1811_v43  ;;  %v1765_v51 = vrot.slane %v3024_v48, 2  ;;  %v1339_v49 = vpop.f32.mrb[45].mxu1  ;;  %v1545_v52 = vpop.f32.mrb[43].mxu0 }
 0x28a   : > { %v1664_v54 = vrot.slane %v1339_v49, 1  ;;  %v1764_v55 = vrot.slane %v1545_v52, 2 }
 0x28b   : > { %v1850_v20 = vmax.f32 %v1834_v50, 0.0 }
 0x28c   : > { %v1665_v56 = vsel %vm951_vm4, %v1663_v53, %v1664_v54  ;;  %v1766_v58 = vsel %vm1048_vm5, %v1764_v55, %v1765_v51  ;;  %v1343_v59 = vpop.f32.mrb[46].mxu1  ;;  %v3027_v60 = vpop.f32.mrb[44].mxu0 }
 0x28d   : > { %1866 = vst [vmem:[#allocation4 + $0x9] sm:$0xff] %v1850_v20  ;;  %v1716_v61 = vadd.f32 %v1665_v56, %v1331_v34  ;;  %v1344_v62 = vpop.f32.mrb[47].mxu1  ;;  %v1555_v63 = vpop.f32.mrb[45].mxu0  ;;  %v1769_v5 = vrot.slane %v3027_v60, 2 }
 0x28e   : > { %v1666_v2 = vrot.slane %v1344_v62, 1  ;;  %v1767_v3 = vrot.slane %v1555_v63, 2 }
 0x28f   : > { %v1812_v4 = vadd.f32 %v1761_v44, %v1716_v61 }
 0x290   : > { %v1667_v6 = vsel %vm951_vm4, %v1664_v54, %v1666_v2  ;;  %v1768_v7 = vsel %vm1048_vm5, %v1765_v51, %v1767_v3  ;;  %v1348_v31 = vpop.f32.mrb[48].mxu1  ;;  %v1881_v8 = vld [vmem:[#allocation4] sm:$0xff]  ;;  %v3030_v9 = vpop.f32.mrb[46].mxu0 }
 0x291   : > { %v1835_v10 = vadd.f32 %v4115_v26, %v1812_v4  ;;  %v1717_v11 = vadd.f32 %v1667_v6, %v1337_v46  ;;  %v1350_v12 = vpop.f32.mrb[49].mxu1  ;;  %2018 = vmatmul.mubr.f32.vlgmr.msra.gmra.mrb[60].mxu0 %v1881_v8  ;;  %3081 = vmatprep.mubr.f32.mxu1 %v1881_v8  ;;  %v1772_v13 = vrot.slane %v3030_v9, 2  ;;  %v1565_v14 = vpop.f32.mrb[47].mxu0 }
 0x292   : > { %v1770_v15 = vrot.slane %v1565_v14, 2  ;;  %2023 = vmatprep.mubr.f32.mxu0 %v3537_v0  ;;  %v1668_v22 = vrot.slane %v1350_v12, 1 }
 0x293   : > { %v1851_v16 = vmax.f32 %v1835_v10, 0.0  ;;  %v1813_v17 = vadd.f32 %v1763_v45, %v1717_v11 }
 0x294   : > { %v4130_v18 = vsel %vm1048_vm5, %v1769_v5, %v1770_v15  ;;  %v4133_v47 = vsel %vm1048_vm5, %v1770_v15, %v1772_v13  ;;  %v1354_v21 = vpop.f32.mrb[50].mxu1  ;;  %v1882_v57 = vld [vmem:[#allocation4 + $0x8] sm:$0xff]  ;;  %v1883_v23 = vld [vmem:[#allocation4 + $0x10] sm:$0xff] }
 0x295   : > { %1867 = vst [vmem:[#allocation4 + $0x19] sm:$0xff] %v1851_v16  ;;  %v1836_v19 = vadd.f32 %v4115_v26, %v1813_v17  ;;  %v1356_v1 = vpop.f32.mrb[51].mxu1  ;;  %2024 = vmatmul.mubr.f32.gmra.mrb[62].mxu0 %v1882_v57  ;;  %3082 = vmatmul.mubr.f32.vlgmr.msra.gmra.mrb[84].mxu1 %v1882_v57 }
 0x296   : > { %v1669_v24 = vrot.slane %v1356_v1, 1  ;;  %3084 = vmatprep.mubr.f32.mxu1 %v1883_v23  ;;  %2029 = vmatprep.mubr.f32.mxu0 %v3537_v0 }
 0x297   : > { %v1852_v25 = vmax.f32 %v1836_v19, 0.0 }
 0x298   : > { %v1670_v27 = vsel %vm951_vm4, %v1668_v22, %v1669_v24  ;;  %v1360_v28 = vpop.f32.mrb[52].mxu1 }
 0x299   : > { %1868 = vst [vmem:[#allocation4 + $0x21] sm:$0xff] %v1852_v25  ;;  %v1718_v29 = vadd.f32 %v1670_v27, %v1348_v31  ;;  %v1361_v30 = vpop.f32.mrb[53].mxu1  ;;  %2030 = vmatmul.mubr.f32.gmra.mrb[64].mxu0 %v1883_v23 }
 0x29a   : > { %v1671_v32 = vrot.slane %v1361_v30, 1  ;;  %2034 = vmatprep.mubr.f32.mxu0 %v3537_v0  ;;  %v3033_v34 = vpop.f32.mrb[48].mxu0 }
 0x29b   : > { %v1814_v33 = vadd.f32 %v1766_v58, %v1718_v29  ;;  %v1775_v35 = vrot.slane %v3033_v34, 2  ;;  %v1575_v36 = vpop.f32.mrb[49].mxu0 }
 0x29c   : > { %v1672_v37 = vsel %vm951_vm4, %v1669_v24, %v1671_v32  ;;  %v1365_v38 = vpop.f32.mrb[54].mxu1  ;;  %v1884_v39 = vld [vmem:[#allocation4 + $0x18] sm:$0xff]  ;;  %v1774_v40 = vrot.slane %v1575_v36, 2 }
 0x29d   : > { %v1837_v41 = vadd.f32 %v4115_v26, %v1814_v33  ;;  %v1719_v42 = vadd.f32 %v1672_v37, %v1354_v21  ;;  %v1367_v43 = vpop.f32.mrb[55].mxu1  ;;  %2035 = vmatmul.mubr.f32.gmra.mrb[66].mxu0 %v1884_v39  ;;  %3085 = vmatmul.mubr.f32.gmra.mrb[86].mxu1 %v1884_v39 }
 0x29e   : > { %v4142_v44 = vsel %vm1048_vm5, %v1774_v40, %v1775_v35  ;;  %2040 = vmatprep.mubr.f32.mxu0 %v3537_v0  ;;  %v1673_v53 = vrot.slane %v1367_v43, 1 }
 0x29f   : > { %v1853_v45 = vmax.f32 %v1837_v41, 0.0  ;;  %v1815_v46 = vadd.f32 %v1768_v7, %v1719_v42 }
 0x2a0   : > { %v1371_v48 = vpop.f32.mrb[56].mxu1  ;;  %v1885_v50 = vld [vmem:[#allocation4 + $0x20] sm:$0xff]  ;;  %v1886_v51 = vld [vmem:[#allocation4 + $0x28] sm:$0xff] }
 0x2a1   : > { %1869 = vst [vmem:[#allocation4 + $0x31] sm:$0xff] %v1853_v45  ;;  %v1838_v49 = vadd.f32 %v4115_v26, %v1815_v46  ;;  %v1373_v52 = vpop.f32.mrb[57].mxu1  ;;  %2041 = vmatmul.mubr.f32.gmra.mrb[68].mxu0 %v1885_v50  ;;  %3087 = vmatprep.mubr.f32.mxu1 %v1885_v50 }
 0x2a2   : > { %v1674_v54 = vrot.slane %v1373_v52, 1  ;;  %v3036_v55 = vpop.f32.mrb[50].mxu0  ;;  %3088 = vmatmul.mubr.f32.gmra.mrb[88].mxu1 %v1886_v51  ;;  %2046 = vmatprep.mubr.f32.mxu0 %v3537_v0 }
 0x2a3   : > { %v1854_v20 = vmax.f32 %v1838_v49, 0.0  ;;  %v1585_v56 = vpop.f32.mrb[51].mxu0  ;;  %v1779_v4 = vrot.slane %v3036_v55, 2 }
 0x2a4   : > { %v1675_v58 = vsel %vm951_vm4, %v1673_v53, %v1674_v54  ;;  %v1777_v59 = vrot.slane %v1585_v56, 2  ;;  %v1377_v60 = vpop.f32.mrb[58].mxu1 }
 0x2a5   : > { %1870 = vst [vmem:[#allocation4 + $0x39] sm:$0xff] %v1854_v20  ;;  %v1720_v61 = vadd.f32 %v1675_v58, %v1365_v38  ;;  %v1378_v62 = vpop.f32.mrb[59].mxu1  ;;  %2047 = vmatmul.mubr.f32.gmra.mrb[70].mxu0 %v1886_v51 }
 0x2a6   : > { %v4149_v63 = vsel %vm1048_vm5, %v1775_v35, %v1777_v59  ;;  %v1676_v2 = vrot.slane %v1378_v62, 1  ;;  %2051 = vmatprep.mubr.f32.mxu0 %v3537_v0 }
 0x2a7   : > { %v1816_v3 = vadd.f32 %v4130_v18, %v1720_v61  ;;  %v3039_v5 = vpop.f32.mrb[52].mxu0 }
 0x2a8   : > { %v1677_v6 = vsel %vm951_vm4, %v1674_v54, %v1676_v2  ;;  %v1382_v7 = vpop.f32.mrb[60].mxu1  ;;  %v1782_v31 = vrot.slane %v3039_v5, 2  ;;  %v1887_v8 = vld [vmem:[#allocation4 + $0x30] sm:$0xff]  ;;  %v1595_v9 = vpop.f32.mrb[53].mxu0 }
 0x2a9   : > { %v1839_v10 = vadd.f32 %v4115_v26, %v1816_v3  ;;  %v1721_v11 = vadd.f32 %v1677_v6, %v1371_v48  ;;  %v1384_v12 = vpop.f32.mrb[61].mxu1  ;;  %2052 = vmatmul.mubr.f32.gmra.mrb[72].mxu0 %v1887_v8  ;;  %3090 = vmatprep.mubr.f32.mxu1 %v1887_v8  ;;  %v1780_v13 = vrot.slane %v1595_v9, 2 }
 0x2aa   : > { %2057 = vmatprep.mubr.f32.mxu0 %v3537_v0 }
 0x2ab   : > { %v1855_v14 = vmax.f32 %v1839_v10, 0.0  ;;  %v1817_v15 = vadd.f32 %v4133_v47, %v1721_v11  ;;  %v4158_v16 = vsel %vm1048_vm5, %v1779_v4, %v1780_v13  ;;  %v4161_v17 = vsel %vm1048_vm5, %v1780_v13, %v1782_v31  ;;  %v3042_v18 = vpop.f32.mrb[54].mxu0 }
 0x2ac   : > { %v1785_v21 = vrot.slane %v3042_v18, 2  ;;  %v1388_v57 = vpop.f32.mrb[62].mxu1  ;;  %v1605_v23 = vpop.f32.mrb[55].mxu0  ;;  %v1888_v19 = vld [vmem:[#allocation4 + $0x38] sm:$0xff]  ;;  %v1889_v1 = vld [vmem:[#allocation4 + $0x40] sm:$0xff]  ;;  %v1678_v47 = vrot.slane %v1384_v12, 1 }
 0x2ad   : > { %1871 = vst [vmem:[#allocation4 + $0x49] sm:$0xff] %v1855_v14  ;;  %v1840_v22 = vadd.f32 %v4115_v26, %v1817_v15  ;;  %v1784_v24 = vrot.slane %v1605_v23, 2  ;;  %v1390_v25 = vpop.f32.mrb[63].mxu1  ;;  %2058 = vmatmul.mubr.f32.gmra.mrb[74].mxu0 %v1888_v19  ;;  %3091 = vmatmul.mubr.f32.gmra.mrb[90].mxu1 %v1888_v19 }
 0x2ae   : > { %v1679_v27 = vrot.slane %v1390_v25, 1  ;;  %3093 = vmatprep.mubr.f32.mxu1 %v1889_v1  ;;  %2063 = vmatprep.mubr.f32.mxu0 %v3537_v0 }
 0x2af   : > { %v1856_v28 = vmax.f32 %v1840_v22, 0.0  ;;  %v4166_v29 = vsel %vm1048_vm5, %v1784_v24, %v1785_v21  ;;  %v3045_v30 = vpop.f32.mrb[56].mxu0 }
 0x2b0   : > { %v1680_v32 = vsel %vm951_vm4, %v1678_v47, %v1679_v27  ;;  %v1394_v34 = vpop.f32.mrb[64].mxu1  ;;  %v1615_v33 = vpop.f32.mrb[57].mxu0  ;;  %v1789_v51 = vrot.slane %v3045_v30, 2 }
 0x2b1   : > { %1872 = vst [vmem:[#allocation4 + $0x51] sm:$0xff] %v1856_v28  ;;  %v1722_v35 = vadd.f32 %v1680_v32, %v1382_v7  ;;  %v1787_v36 = vrot.slane %v1615_v33, 2  ;;  %v1395_v37 = vpop.f32.mrb[65].mxu1  ;;  %2064 = vmatmul.mubr.f32.gmra.mrb[76].mxu0 %v1889_v1 }
 0x2b2   : > { %v1681_v38 = vrot.slane %v1395_v37, 1  ;;  %2068 = vmatprep.mubr.f32.mxu0 %v3537_v0 }
 0x2b3   : > { %v1818_v39 = vadd.f32 %v4142_v44, %v1722_v35  ;;  %v4172_v40 = vsel %vm1048_vm5, %v1785_v21, %v1787_v36  ;;  %v3048_v41 = vpop.f32.mrb[58].mxu0 }
 0x2b4   : > { %v1682_v42 = vsel %vm951_vm4, %v1679_v27, %v1681_v38  ;;  %v1792_v43 = vrot.slane %v3048_v41, 2  ;;  %v1399_v45 = vpop.f32.mrb[66].mxu1  ;;  %v1625_v46 = vpop.f32.mrb[59].mxu0  ;;  %v1890_v48 = vld [vmem:[#allocation4 + $0x48] sm:$0xff] }
 0x2b5   : > { %v1841_v50 = vadd.f32 %v4115_v26, %v1818_v39  ;;  %v1723_v49 = vadd.f32 %v1682_v42, %v1388_v57  ;;  %v1790_v52 = vrot.slane %v1625_v46, 2  ;;  %v1401_v53 = vpop.f32.mrb[67].mxu1  ;;  %2069 = vmatmul.mubr.f32.gmra.mrb[78].mxu0 %v1890_v48  ;;  %3094 = vmatmul.mubr.f32.gmra.mrb[92].mxu1 %v1890_v48 }
 0x2b6   : > { %2074 = vmatprep.mubr.f32.mxu0 %v3537_v0  ;;  %v1683_v62 = vrot.slane %v1401_v53, 1 }
 0x2b7   : > { %v1857_v44 = vmax.f32 %v1841_v50, 0.0  ;;  %v1819_v54 = vadd.f32 %v4149_v63, %v1723_v49  ;;  %v4179_v55 = vsel %vm1048_vm5, %v1789_v51, %v1790_v52  ;;  %v4182_v20 = vsel %vm1048_vm5, %v1790_v52, %v1792_v43 }
 0x2b8   : > { %v1405_v56 = vpop.f32.mrb[68].mxu1  ;;  %v1891_v58 = vld [vmem:[#allocation4 + $0x50] sm:$0xff]  ;;  %v1892_v59 = vld [vmem:[#allocation4 + $0x58] sm:$0xff] }
 0x2b9   : > { %1873 = vst [vmem:[#allocation4 + $0x61] sm:$0xff] %v1857_v44  ;;  %v1842_v60 = vadd.f32 %v4115_v26, %v1819_v54  ;;  %v1407_v61 = vpop.f32.mrb[69].mxu1  ;;  %2075 = vmatmul.mubr.f32.gmra.mrb[80].mxu0 %v1891_v58  ;;  %3096 = vmatprep.mubr.f32.mxu1 %v1891_v58 }
 0x2ba   : > { %v1684_v2 = vrot.slane %v1407_v61, 1  ;;  %3097 = vmatmul.mubr.f32.gmra.mrb[94].mxu1 %v1892_v59  ;;  %2080 = vmatprep.mubr.f32.mxu0 %v3537_v0 }
 0x2bb   : > { %v1858_v63 = vmax.f32 %v1842_v60, 0.0 }
 0x2bc   : > { %v1685_v3 = vsel %vm951_vm4, %v1683_v62, %v1684_v2  ;;  %v1411_v4 = vpop.f32.mrb[70].mxu1 }
 0x2bd   : > { %1874 = vst [vmem:[#allocation4 + $0x69] sm:$0xff] %v1858_v63  ;;  %v1724_v5 = vadd.f32 %v1685_v3, %v1399_v45  ;;  %v1412_v6 = vpop.f32.mrb[71].mxu1  ;;  %2081 = vmatmul.mubr.f32.gmra.mrb[82].mxu0 %v1892_v59 }
 0x2be   : > { %v1686_v7 = vrot.slane %v1412_v6, 1  ;;  %2085 = vmatprep.mubr.f32.mxu0 %v3537_v0 }
 0x2bf   : > { %v1820_v31 = vadd.f32 %v4158_v16, %v1724_v5 }
 0x2c0   : > { %v1687_v8 = vsel %vm951_vm4, %v1684_v2, %v1686_v7  ;;  %v1416_v9 = vpop.f32.mrb[72].mxu1  ;;  %v1893_v10 = vld [vmem:[#allocation4 + $0x60] sm:$0xff] }
 0x2c1   : > { %v1843_v11 = vadd.f32 %v4115_v26, %v1820_v31  ;;  %v1725_v12 = vadd.f32 %v1687_v8, %v1405_v56  ;;  %v1418_v13 = vpop.f32.mrb[73].mxu1  ;;  %2086 = vmatmul.mubr.f32.gmra.mrb[84].mxu0 %v1893_v10  ;;  %3099 = vmatprep.mubr.f32.mxu1 %v1893_v10 }
 0x2c2   : > { %2091 = vmatprep.mubr.f32.mxu0 %v3537_v0  ;;  %v1688_v19 = vrot.slane %v1418_v13, 1 }
 0x2c3   : > { %v1859_v14 = vmax.f32 %v1843_v11, 0.0  ;;  %v1821_v15 = vadd.f32 %v4161_v17, %v1725_v12 }
 0x2c4   : > { %v1422_v18 = vpop.f32.mrb[74].mxu1  ;;  %v1894_v21 = vld [vmem:[#allocation4 + $0x68] sm:$0xff]  ;;  %v1895_v57 = vld [vmem:[#allocation4 + $0x70] sm:$0xff] }
 0x2c5   : > { %1875 = vst [vmem:[#allocation4 + $0x79] sm:$0xff] %v1859_v14  ;;  %v1844_v16 = vadd.f32 %v4115_v26, %v1821_v15  ;;  %v1424_v23 = vpop.f32.mrb[75].mxu1  ;;  %2092 = vmatmul.mubr.f32.gmra.mrb[86].mxu0 %v1894_v21  ;;  %3100 = vmatmul.mubr.f32.gmra.mrb[96].mxu1 %v1894_v21 }
 0x2c6   : > { %v1689_v1 = vrot.slane %v1424_v23, 1  ;;  %3102 = vmatprep.mubr.f32.mxu1 %v1895_v57  ;;  %2097 = vmatprep.mubr.f32.mxu0 %v3537_v0 }
 0x2c7   : > { %v1860_v22 = vmax.f32 %v1844_v16, 0.0 }
 0x2c8   : > { %v1690_v24 = vsel %vm951_vm4, %v1688_v19, %v1689_v1  ;;  %v1428_v25 = vpop.f32.mrb[76].mxu1 }
 0x2c9   : > { %1876 = vst [vmem:[#allocation4 + $0x81] sm:$0xff] %v1860_v22  ;;  %v1726_v17 = vadd.f32 %v1690_v24, %v1416_v9  ;;  %v1429_v47 = vpop.f32.mrb[77].mxu1  ;;  %2098 = vmatmul.mubr.f32.gmra.mrb[88].mxu0 %v1895_v57  ;;  %v4222_v25 = vld [vmem:[%s4324_s6] ss:$0 sm:$0xff] }
 0x2ca   : > { %v1691_v27 = vrot.slane %v1429_v47, 1  ;;  %2102 = vmatprep.mubr.f32.mxu0 %v3537_v0 }
 0x2cb   : > { %v1822_v28 = vadd.f32 %v4166_v29, %v1726_v17 }
 0x2cc   : > { %v1692_v30 = vsel %vm951_vm4, %v1689_v1, %v1691_v27  ;;  %v1433_v32 = vpop.f32.mrb[78].mxu1  ;;  %v1896_v34 = vld [vmem:[#allocation4 + $0x78] sm:$0xff] }
 0x2cd   : > { %v1845_v33 = vadd.f32 %v4115_v26, %v1822_v28  ;;  %v1727_v35 = vadd.f32 %v1692_v30, %v1422_v18  ;;  %v1435_v36 = vpop.f32.mrb[79].mxu1  ;;  %2103 = vmatmul.mubr.f32.gmra.mrb[90].mxu0 %v1896_v34  ;;  %3103 = vmatmul.mubr.f32.gmra.mrb[98].mxu1 %v1896_v34 }
 0x2ce   : > { %2108 = vmatprep.mubr.f32.mxu0 %v3537_v0  ;;  %v1693_v45 = vrot.slane %v1435_v36, 1 }
 0x2cf   : > { %v1861_v37 = vmax.f32 %v1845_v33, 0.0  ;;  %v1823_v38 = vadd.f32 %v4172_v40, %v1727_v35 }
 0x2d0   : > { %v1439_v39 = vpop.f32.mrb[80].mxu1  ;;  %v1897_v41 = vld [vmem:[#allocation4 + $0x80] sm:$0xff]  ;;  %v1898_v42 = vld [vmem:[#allocation4 + $0x88] sm:$0xff] }
 0x2d1   : > { %1877 = vst [vmem:[#allocation4 + $0x91] sm:$0xff] %v1861_v37  ;;  %v1846_v29 = vadd.f32 %v4115_v26, %v1823_v38  ;;  %v1441_v43 = vpop.f32.mrb[81].mxu1  ;;  %2109 = vmatmul.mubr.f32.gmra.mrb[92].mxu0 %v1897_v41  ;;  %3105 = vmatprep.mubr.f32.mxu1 %v1897_v41 }
 0x2d2   : > { %v1694_v46 = vrot.slane %v1441_v43, 1  ;;  %3106 = vmatmul.mubr.f32.gmra.mrb[100].mxu1 %v1898_v42  ;;  %2114 = vmatprep.mubr.f32.mxu0 %v3537_v0 }
 0x2d3   : > { %v1862_v48 = vmax.f32 %v1846_v29, 0.0 }
 0x2d4   : > { %v1695_v50 = vsel %vm951_vm4, %v1693_v45, %v1694_v46  ;;  %v1445_v51 = vpop.f32.mrb[82].mxu1 }
 0x2d5   : > { %1878 = vst [vmem:[#allocation4 + $0x99] sm:$0xff] %v1862_v48  ;;  %v1728_v40 = vadd.f32 %v1695_v50, %v1433_v32  ;;  %v1446_v49 = vpop.f32.mrb[83].mxu1  ;;  %2115 = vmatmul.mubr.f32.gmra.mrb[94].mxu0 %v1898_v42 }
 0x2d6   : > { %v1696_v52 = vrot.slane %v1446_v49, 1  ;;  %2119 = vmatprep.mubr.f32.mxu0 %v3537_v0 }
 0x2d7   : > { %v1824_v53 = vadd.f32 %v4179_v55, %v1728_v40 }
 0x2d8   : > { %v1697_v44 = vsel %vm951_vm4, %v1694_v46, %v1696_v52  ;;  %v1899_v54 = vld [vmem:[#allocation4 + $0x90] sm:$0xff] }
 0x2d9   : > { %v1847_v56 = vadd.f32 %v4115_v26, %v1824_v53  ;;  %v1729_v58 = vadd.f32 %v1697_v44, %v1439_v39  ;;  %2120 = vmatmul.mubr.f32.gmra.mrb[96].mxu0 %v1899_v54  ;;  %3108 = vmatprep.mubr.f32.mxu1 %v1899_v54 }
 0x2da   : > { %2125 = vmatprep.mubr.f32.mxu0 %v3537_v0 }
 0x2db   : > { %v1863_v59 = vmax.f32 %v1847_v56, 0.0  ;;  %v1825_v60 = vadd.f32 %v4182_v20, %v1729_v58 }
 0x2dc   : > { %v1900_v61 = vld [vmem:[#allocation4 + $0x98] sm:$0xff]  ;;  %v1901_v62 = vld [vmem:[#allocation4 + $0xa0] sm:$0xff] }
 0x2dd   : > { %1879 = vst [vmem:[#allocation4 + $0xa9] sm:$0xff] %v1863_v59  ;;  %v1848_v2 = vadd.f32 %v4115_v26, %v1825_v60  ;;  %2126 = vmatmul.mubr.f32.gmra.mrb[98].mxu0 %v1900_v61  ;;  %3109 = vmatmul.mubr.f32.gmra.mrb[102].mxu1 %v1900_v61 }
 0x2de   : > { %3111 = vmatprep.mubr.f32.mxu1 %v1901_v62  ;;  %2131 = vmatprep.mubr.f32.mxu0 %v3537_v0 }
 0x2df   : > { %v1864_v55 = vmax.f32 %v1848_v2, 0.0 }
 0x2e1   : > { %1880 = vst [vmem:[#allocation4 + $0xb1] sm:$0xff] %v1864_v55  ;;  %2132 = vmatmul.mubr.f32.gmra.mrb[100].mxu0 %v1901_v62 }
 0x2e2   : > { %2136 = vmatprep.mubr.f32.mxu0 %v3537_v0 }
 0x2e4   : > { %v1902_v63 = vld [vmem:[#allocation4 + $0xa8] sm:$0xff] }
 0x2e5   : > { %2137 = vmatmul.mubr.f32.gmra.mrb[102].mxu0 %v1902_v63  ;;  %3112 = vmatmul.mubr.f32.gmra.mrb[104].mxu1 %v1902_v63 }
 0x2e6   : > { %2142 = vmatprep.mubr.f32.mxu0 %v3537_v0 }
 0x2e8   : > { %v1903_v20 = vld [vmem:[#allocation4 + $0xb0] sm:$0xff]  ;;  %v1904_v3 = vld [vmem:[#allocation4 + $0xb8] sm:$0xff] }
 0x2e9   : > { %2143 = vmatmul.mubr.f32.gmra.mrb[104].mxu0 %v1903_v20  ;;  %3114 = vmatprep.mubr.f32.mxu1 %v1903_v20 }
 0x2ea   : > { %3115 = vmatmul.mubr.f32.gmra.mrb[106].mxu1 %v1904_v3  ;;  %2148 = vmatprep.mubr.f32.mxu0 %v3537_v0 }
 0x2ed   : > { %2149 = vmatmul.mubr.f32.gmra.mrb[106].mxu0 %v1904_v3 }
 0x364   : > { %v2019_v26 = vpop.f32.mrb[60].mxu0 }
 0x365   : > { %v2021_v4 = vpop.f32.mrb[61].mxu0 }
 0x366   : > { %v2363_v9 = vrot.slane %v2021_v4, 1 }
 0x368   : > { %v2025_v5 = vpop.f32.mrb[62].mxu0  ;;  %v3083_v6 = vpop.f32.mrb[84].mxu1 }
 0x369   : > { %v2460_v7 = vrot.slane %v3083_v6, 2  ;;  %v2027_v31 = vpop.f32.mrb[63].mxu0  ;;  %v2220_v8 = vpop.f32.mrb[85].mxu1 }
 0x36a   : > { %v2364_v10 = vrot.slane %v2027_v31, 1  ;;  %v2459_v11 = vrot.slane %v2220_v8, 2 }
 0x36c   : > { %v2365_v12 = vsel %vm951_vm4, %v2363_v9, %v2364_v10  ;;  %v2461_v13 = vsel %vm1048_vm5, %v2459_v11, %v2460_v7  ;;  %v2031_v14 = vpop.f32.mrb[64].mxu0 }
 0x36d   : > { %v2419_v15 = vadd.f32 %v2365_v12, %v2019_v26  ;;  %v2032_v18 = vpop.f32.mrb[65].mxu0 }
 0x36e   : > { %v2366_v21 = vrot.slane %v2032_v18, 1 }
 0x36f   : > { %v2515_v0 = vadd.f32 %v2461_v13, %v2419_v15 }
 0x370   : > { %v2367_v57 = vsel %vm951_vm4, %v2364_v10, %v2366_v21  ;;  %v2036_v16 = vpop.f32.mrb[66].mxu0  ;;  %v3086_v23 = vpop.f32.mrb[86].mxu1 }
 0x371   : > { %v2420_v19 = vadd.f32 %v2367_v57, %v2025_v5  ;;  %v2038_v1 = vpop.f32.mrb[67].mxu0  ;;  %v2230_v22 = vpop.f32.mrb[87].mxu1  ;;  %v2538_v36 = vadd.f32 %v4222_v25, %v2515_v0  ;;  %v2464_v37 = vrot.slane %v3086_v23, 2 }
 0x372   : > { %v2462_v24 = vrot.slane %v2230_v22, 2  ;;  %v2368_v32 = vrot.slane %v2038_v1, 1 }
 0x374   : > { %v2463_v17 = vsel %vm1048_vm5, %v2460_v7, %v2462_v24  ;;  %v2042_v47 = vpop.f32.mrb[68].mxu0 }
 0x375   : > { %v2516_v27 = vadd.f32 %v2463_v17, %v2420_v19  ;;  %v2044_v28 = vpop.f32.mrb[69].mxu0  ;;  %v3089_v30 = vpop.f32.mrb[88].mxu1 }
 0x376   : > { %v2369_v34 = vrot.slane %v2044_v28, 1  ;;  %v2467_v33 = vrot.slane %v3089_v30, 2  ;;  %v2240_v35 = vpop.f32.mrb[89].mxu1 }
 0x377   : > { %v2539_v38 = vadd.f32 %v4222_v25, %v2516_v27  ;;  %v2465_v39 = vrot.slane %v2240_v35, 2 }
 0x378   : > { %v2370_v41 = vsel %vm951_vm4, %v2368_v32, %v2369_v34  ;;  %v2048_v42 = vpop.f32.mrb[70].mxu0 }
 0x379   : > { %v2554_v29 = vadd.f32 %v2539_v38, %v2538_v36  ;;  %v2421_v43 = vadd.f32 %v2370_v41, %v2036_v16  ;;  %v2466_v45 = vsel %vm1048_vm5, %v2464_v37, %v2465_v39  ;;  %v2468_v46 = vsel %vm1048_vm5, %v2465_v39, %v2467_v33  ;;  %v2049_v48 = vpop.f32.mrb[71].mxu0 }
 0x37a   : > { %v2371_v50 = vrot.slane %v2049_v48, 1 }
 0x37b   : > { %v2555_v51 = vrot.slane %v2554_v29, 4  ;;  %v2517_v40 = vadd.f32 %v2466_v45, %v2421_v43 }
 0x37c   : > { %v2372_v49 = vsel %vm951_vm4, %v2369_v34, %v2371_v50  ;;  %v2053_v52 = vpop.f32.mrb[72].mxu0 }
 0x37d   : > { %v2556_v53 = vadd.f32 %v2555_v51, %v2554_v29  ;;  %v2422_v44 = vadd.f32 %v2372_v49, %v2042_v47  ;;  %v2055_v54 = vpop.f32.mrb[73].mxu0  ;;  %v2540_v61 = vadd.f32 %v4222_v25, %v2517_v40 }
 0x37e   : > { %v2373_v20 = vrot.slane %v2055_v54, 1 }
 0x37f   : > { %v2518_v56 = vadd.f32 %v2468_v46, %v2422_v44  ;;  %v2557_v58 = vrot.slane %v2556_v53, 2 }
 0x380   : > { %v2059_v59 = vpop.f32.mrb[74].mxu0  ;;  %v3092_v60 = vpop.f32.mrb[90].mxu1 }
 0x381   : > { %v2541_v62 = vadd.f32 %v4222_v25, %v2518_v56  ;;  %v2470_v2 = vrot.slane %v3092_v60, 2  ;;  %v2061_v55 = vpop.f32.mrb[75].mxu0  ;;  %v2250_v63 = vpop.f32.mrb[91].mxu1  ;;  %v2558_v5 = vadd.f32 %v2557_v58, %v2556_v53 }
 0x382   : > { %v2374_v3 = vrot.slane %v2061_v55, 1  ;;  %v2469_v26 = vrot.slane %v2250_v63, 2 }
 0x383   : > { %v2561_v4 = vadd.f32 %v2541_v62, %v2540_v61  ;;  %v2559_v14 = vrot.slane %v2558_v5, 1 }
 0x384   : > { %v2375_v6 = vsel %vm951_vm4, %v2373_v20, %v2374_v3  ;;  %v2471_v7 = vsel %vm1048_vm5, %v2469_v26, %v2470_v2  ;;  %v2065_v31 = vpop.f32.mrb[76].mxu0 }
 0x385   : > { %v2562_v8 = vrot.slane %v2561_v4, 4  ;;  %v2423_v9 = vadd.f32 %v2375_v6, %v2053_v52  ;;  %v2066_v10 = vpop.f32.mrb[77].mxu0  ;;  %v2560_v22 = vadd.f32 %v2559_v14, %v2558_v5 }
 0x386   : > { %v2376_v11 = vrot.slane %v2066_v10, 1 }
 0x387   : > { %v2563_v12 = vadd.f32 %v2562_v8, %v2561_v4  ;;  %v2519_v13 = vadd.f32 %v2471_v7, %v2423_v9  ;;  %v2611_v42 = vmul.f32 0.0625, %v2560_v22 }
 0x388   : > { %v2377_v15 = vsel %vm951_vm4, %v2374_v3, %v2376_v11  ;;  %v2070_v18 = vpop.f32.mrb[78].mxu0  ;;  %v3095_v21 = vpop.f32.mrb[92].mxu1 }
 0x389   : > { %v2564_v0 = vrot.slane %v2563_v12, 2  ;;  %v2424_v57 = vadd.f32 %v2377_v15, %v2059_v59  ;;  %v2072_v16 = vpop.f32.mrb[79].mxu0  ;;  %v2260_v23 = vpop.f32.mrb[93].mxu1  ;;  %v2542_v32 = vadd.f32 %v4222_v25, %v2519_v13  ;;  %v2474_v38 = vrot.slane %v3095_v21, 2 }
 0x38a   : > { %v2472_v19 = vrot.slane %v2260_v23, 2  ;;  %v2378_v34 = vrot.slane %v2072_v16, 1 }
 0x38b   : > { %v2565_v1 = vadd.f32 %v2564_v0, %v2563_v12 }
 0x38c   : > { %v2473_v24 = vsel %vm1048_vm5, %v2470_v2, %v2472_v19  ;;  %v2076_v17 = vpop.f32.mrb[80].mxu0 }
 0x38d   : > { %v2566_v47 = vrot.slane %v2565_v1, 1  ;;  %v2520_v27 = vadd.f32 %v2473_v24, %v2424_v57  ;;  %v2078_v28 = vpop.f32.mrb[81].mxu0  ;;  %v3098_v30 = vpop.f32.mrb[94].mxu1 }
 0x38e   : > { %v2379_v33 = vrot.slane %v2078_v28, 1  ;;  %v2477_v35 = vrot.slane %v3098_v30, 2  ;;  %v2270_v36 = vpop.f32.mrb[95].mxu1 }
 0x38f   : > { %v2567_v37 = vadd.f32 %v2566_v47, %v2565_v1  ;;  %v2543_v39 = vadd.f32 %v4222_v25, %v2520_v27  ;;  %v2475_v41 = vrot.slane %v2270_v36, 2 }
 0x390   : > { %v2380_v29 = vsel %vm951_vm4, %v2378_v34, %v2379_v33  ;;  %v2082_v43 = vpop.f32.mrb[82].mxu0 }
 0x391   : > { %v2612_v45 = vmul.f32 0.0625, %v2567_v37  ;;  %v2568_v46 = vadd.f32 %v2543_v39, %v2542_v32  ;;  %v2425_v48 = vadd.f32 %v2380_v29, %v2070_v18  ;;  %v2476_v50 = vsel %vm1048_vm5, %v2474_v38, %v2475_v41  ;;  %v2083_v51 = vpop.f32.mrb[83].mxu0 }
 0x392   : > { %v2478_v40 = vsel %vm1048_vm5, %v2475_v41, %v2477_v35  ;;  %v2381_v49 = vrot.slane %v2083_v51, 1 }
 0x393   : > { %v2569_v52 = vrot.slane %v2568_v46, 4  ;;  %v2521_v53 = vadd.f32 %v2476_v50, %v2425_v48  ;;  %v2628_v44 = vsel %vm2627_vm6, %v2612_v45, %v2611_v42 }
 0x394   : > { %v2382_v54 = vsel %vm951_vm4, %v2379_v33, %v2381_v49  ;;  %v2087_v56 = vpop.f32.mrb[84].mxu0 }
 0x395   : > { %v2570_v58 = vadd.f32 %v2569_v52, %v2568_v46  ;;  %v2426_v59 = vadd.f32 %v2382_v54, %v2076_v17  ;;  %v2089_v60 = vpop.f32.mrb[85].mxu0  ;;  %v2544_v20 = vadd.f32 %v4222_v25, %v2521_v53 }
 0x396   : > { %v2383_v6 = vrot.slane %v2089_v60, 1 }
 0x397   : > { %v2571_v61 = vrot.slane %v2570_v58, 2  ;;  %v2522_v62 = vadd.f32 %v2478_v40, %v2426_v59 }
 0x398   : > { %v2093_v2 = vpop.f32.mrb[86].mxu0  ;;  %v3101_v55 = vpop.f32.mrb[96].mxu1 }
 0x399   : > { %v2572_v63 = vadd.f32 %v2571_v61, %v2570_v58  ;;  %v2545_v3 = vadd.f32 %v4222_v25, %v2522_v62  ;;  %v2480_v26 = vrot.slane %v3101_v55, 2  ;;  %v2095_v4 = vpop.f32.mrb[87].mxu0  ;;  %v2280_v5 = vpop.f32.mrb[97].mxu1 }
 0x39a   : > { %v2384_v7 = vrot.slane %v2095_v4, 1  ;;  %v2479_v31 = vrot.slane %v2280_v5, 2 }
 0x39b   : > { %v2573_v8 = vrot.slane %v2572_v63, 1  ;;  %v2575_v9 = vadd.f32 %v2545_v3, %v2544_v20 }
 0x39c   : > { %v2385_v10 = vsel %vm951_vm4, %v2383_v6, %v2384_v7  ;;  %v2481_v11 = vsel %vm1048_vm5, %v2479_v31, %v2480_v26  ;;  %v2099_v12 = vpop.f32.mrb[88].mxu0 }
 0x39d   : > { %v2574_v13 = vadd.f32 %v2573_v8, %v2572_v63  ;;  %v2576_v14 = vrot.slane %v2575_v9, 4  ;;  %v2427_v15 = vadd.f32 %v2385_v10, %v2087_v56  ;;  %v2100_v18 = vpop.f32.mrb[89].mxu0 }
 0x39e   : > { %v2386_v21 = vrot.slane %v2100_v18, 1 }
 0x39f   : > { %v2613_v0 = vmul.f32 0.0625, %v2574_v13  ;;  %v2577_v57 = vadd.f32 %v2576_v14, %v2575_v9  ;;  %v2523_v16 = vadd.f32 %v2481_v11, %v2427_v15 }
 0x3a0   : > { %v2387_v23 = vsel %vm951_vm4, %v2384_v7, %v2386_v21  ;;  %v2104_v19 = vpop.f32.mrb[90].mxu0  ;;  %v3104_v1 = vpop.f32.mrb[98].mxu1 }
 0x3a1   : > { %v2578_v22 = vrot.slane %v2577_v57, 2  ;;  %v2428_v24 = vadd.f32 %v2387_v23, %v2093_v2  ;;  %v2106_v17 = vpop.f32.mrb[91].mxu0  ;;  %v2290_v47 = vpop.f32.mrb[99].mxu1  ;;  %v2630_v28 = vsel %vm2629_vm7, %v2613_v0, %v2628_v44  ;;  %v2546_v38 = vadd.f32 %v4222_v25, %v2523_v16 }
 0x3a2   : > { %v2482_v27 = vrot.slane %v2290_v47, 2  ;;  %v2388_v39 = vrot.slane %v2106_v17, 1  ;;  %v2484_v45 = vrot.slane %v3104_v1, 2 }
 0x3a3   : > { %v2579_v30 = vadd.f32 %v2578_v22, %v2577_v57 }
 0x3a4   : > { %v2483_v32 = vsel %vm1048_vm5, %v2480_v26, %v2482_v27  ;;  %v2110_v34 = vpop.f32.mrb[92].mxu0 }
 0x3a5   : > { %v2580_v33 = vrot.slane %v2579_v30, 1  ;;  %v2524_v35 = vadd.f32 %v2483_v32, %v2428_v24  ;;  %v2112_v36 = vpop.f32.mrb[93].mxu0  ;;  %v3107_v37 = vpop.f32.mrb[100].mxu1 }
 0x3a6   : > { %v2389_v41 = vrot.slane %v2112_v36, 1  ;;  %v2487_v42 = vrot.slane %v3107_v37, 2  ;;  %v2300_v29 = vpop.f32.mrb[101].mxu1 }
 0x3a7   : > { %v2581_v43 = vadd.f32 %v2580_v33, %v2579_v30  ;;  %v2547_v46 = vadd.f32 %v4222_v25, %v2524_v35  ;;  %v2485_v48 = vrot.slane %v2300_v29, 2 }
 0x3a8   : > { %v2390_v50 = vsel %vm951_vm4, %v2388_v39, %v2389_v41  ;;  %v2116_v51 = vpop.f32.mrb[94].mxu0 }
 0x3a9   : > { %v2614_v40 = vmul.f32 0.0625, %v2581_v43  ;;  %v2582_v49 = vadd.f32 %v2547_v46, %v2546_v38  ;;  %v2429_v52 = vadd.f32 %v2390_v50, %v2104_v19  ;;  %v2486_v53 = vsel %vm1048_vm5, %v2484_v45, %v2485_v48  ;;  %v2117_v44 = vpop.f32.mrb[95].mxu0 }
 0x3aa   : > { %v2488_v54 = vsel %vm1048_vm5, %v2485_v48, %v2487_v42  ;;  %v2391_v56 = vrot.slane %v2117_v44, 1 }
 0x3ab   : > { %v2583_v58 = vrot.slane %v2582_v49, 4  ;;  %v2525_v59 = vadd.f32 %v2486_v53, %v2429_v52  ;;  %v2632_v60 = vsel %vm2631_vm8, %v2614_v40, %v2630_v28 }
 0x3ac   : > { %v2392_v61 = vsel %vm951_vm4, %v2389_v41, %v2391_v56  ;;  %v2121_v62 = vpop.f32.mrb[96].mxu0 }
 0x3ad   : > { %v2584_v2 = vadd.f32 %v2583_v58, %v2582_v49  ;;  %v2430_v55 = vadd.f32 %v2392_v61, %v2110_v34  ;;  %v2123_v63 = vpop.f32.mrb[97].mxu0  ;;  %v2548_v6 = vadd.f32 %v4222_v25, %v2525_v59 }
 0x3ae   : > { %v2393_v10 = vrot.slane %v2123_v63, 1 }
 0x3af   : > { %v2585_v20 = vrot.slane %v2584_v2, 2  ;;  %v2526_v3 = vadd.f32 %v2488_v54, %v2430_v55 }
 0x3b0   : > { %v2127_v26 = vpop.f32.mrb[98].mxu0  ;;  %v3110_v4 = vpop.f32.mrb[102].mxu1 }
 0x3b1   : > { %v2586_v5 = vadd.f32 %v2585_v20, %v2584_v2  ;;  %v2549_v7 = vadd.f32 %v4222_v25, %v2526_v3  ;;  %v2490_v31 = vrot.slane %v3110_v4, 2  ;;  %v2129_v8 = vpop.f32.mrb[99].mxu0  ;;  %v2310_v9 = vpop.f32.mrb[103].mxu1 }
 0x3b2   : > { %v2394_v11 = vrot.slane %v2129_v8, 1  ;;  %v2489_v12 = vrot.slane %v2310_v9, 2 }
 0x3b3   : > { %v2587_v13 = vrot.slane %v2586_v5, 1  ;;  %v2589_v14 = vadd.f32 %v2549_v7, %v2548_v6 }
 0x3b4   : > { %v2395_v15 = vsel %vm951_vm4, %v2393_v10, %v2394_v11  ;;  %v2491_v18 = vsel %vm1048_vm5, %v2489_v12, %v2490_v31  ;;  %v2133_v21 = vpop.f32.mrb[100].mxu0 }
 0x3b5   : > { %v2588_v0 = vadd.f32 %v2587_v13, %v2586_v5  ;;  %v2590_v57 = vrot.slane %v2589_v14, 4  ;;  %v2431_v16 = vadd.f32 %v2395_v15, %v2121_v62  ;;  %v2134_v23 = vpop.f32.mrb[101].mxu0 }
 0x3b6   : > { %v2396_v19 = vrot.slane %v2134_v23, 1 }
 0x3b7   : > { %v2615_v1 = vmul.f32 0.0625, %v2588_v0  ;;  %v2591_v22 = vadd.f32 %v2590_v57, %v2589_v14  ;;  %v2527_v24 = vadd.f32 %v2491_v18, %v2431_v16 }
 0x3b8   : > { %v2397_v17 = vsel %vm951_vm4, %v2394_v11, %v2396_v19  ;;  %v2138_v47 = vpop.f32.mrb[102].mxu0  ;;  %v3113_v27 = vpop.f32.mrb[104].mxu1 }
 0x3b9   : > { %v2592_v28 = vrot.slane %v2591_v22, 2  ;;  %v2432_v30 = vadd.f32 %v2397_v17, %v2127_v26  ;;  %v2140_v32 = vpop.f32.mrb[103].mxu0  ;;  %v2320_v34 = vpop.f32.mrb[105].mxu1  ;;  %v2634_v35 = vsel %vm2633_vm9, %v2615_v1, %v2632_v60  ;;  %v2550_v43 = vadd.f32 %v4222_v25, %v2527_v24 }
 0x3ba   : > { %v2492_v33 = vrot.slane %v2320_v34, 2  ;;  %v2398_v45 = vrot.slane %v2140_v32, 1  ;;  %v2494_v51 = vrot.slane %v3113_v27, 2 }
 0x3bb   : > { %v2593_v36 = vadd.f32 %v2592_v28, %v2591_v22 }
 0x3bc   : > { %v2493_v37 = vsel %vm1048_vm5, %v2490_v31, %v2492_v33  ;;  %v2144_v38 = vpop.f32.mrb[104].mxu0 }
 0x3bd   : > { %v2594_v39 = vrot.slane %v2593_v36, 1  ;;  %v2528_v41 = vadd.f32 %v2493_v37, %v2432_v30  ;;  %v2146_v42 = vpop.f32.mrb[105].mxu0  ;;  %v3116_v29 = vpop.f32.mrb[106].mxu1 }
 0x3be   : > { %v2399_v46 = vrot.slane %v2146_v42, 1  ;;  %v2497_v48 = vrot.slane %v3116_v29, 2  ;;  %v2330_v50 = vpop.f32.mrb[107].mxu1 }
 0x3bf   : > { %v2551_v40 = vadd.f32 %v4222_v25, %v2528_v41  ;;  %v2495_v49 = vrot.slane %v2330_v50, 2  ;;  %v2595_v52 = vadd.f32 %v2594_v39, %v2593_v36 }
 0x3c0   : > { %v2400_v53 = vsel %vm951_vm4, %v2398_v45, %v2399_v46  ;;  %v2150_v44 = vpop.f32.mrb[106].mxu0 }
 0x3c1   : > { %v2596_v54 = vadd.f32 %v2551_v40, %v2550_v43  ;;  %v2433_v56 = vadd.f32 %v2400_v53, %v2138_v47  ;;  %v2496_v58 = vsel %vm1048_vm5, %v2494_v51, %v2495_v49  ;;  %v2498_v59 = vsel %vm1048_vm5, %v2495_v49, %v2497_v48  ;;  %v2151_v60 = vpop.f32.mrb[107].mxu0 }
 0x3c2   : > { %v2401_v61 = vrot.slane %v2151_v60, 1  ;;  %v2616_v62 = vmul.f32 0.0625, %v2595_v52 }
 0x3c3   : > { %v2597_v2 = vrot.slane %v2596_v54, 4  ;;  %v2529_v55 = vadd.f32 %v2496_v58, %v2433_v56 }
 0x3c4   : > { %v2402_v63 = vsel %vm951_vm4, %v2399_v46, %v2401_v61  ;;  %v2636_v20 = vsel %vm2635_vm10, %v2616_v62, %v2634_v35 }
 0x3c5   : > { %v2598_v3 = vadd.f32 %v2597_v2, %v2596_v54  ;;  %v2434_v26 = vadd.f32 %v2402_v63, %v2144_v38  ;;  %v2552_v7 = vadd.f32 %v4222_v25, %v2529_v55 }
 0x3c7   : > { %v2599_v4 = vrot.slane %v2598_v3, 2  ;;  %v2530_v5 = vadd.f32 %v2498_v59, %v2434_v26 }
 0x3c9   : > { %v2600_v6 = vadd.f32 %v2599_v4, %v2598_v3  ;;  %v2553_v31 = vadd.f32 %v4222_v25, %v2530_v5 }
 0x3cb   : > { %v2601_v8 = vrot.slane %v2600_v6, 1  ;;  %v2603_v9 = vadd.f32 %v2553_v31, %v2552_v7 }
 0x3cd   : > { %v2604_v10 = vrot.slane %v2603_v9, 4  ;;  %v2602_v11 = vadd.f32 %v2601_v8, %v2600_v6 }
 0x3cf   : > { %v2605_v12 = vadd.f32 %v2604_v10, %v2603_v9  ;;  %v2617_v13 = vmul.f32 0.0625, %v2602_v11 }
 0x3d1   : > { %v2606_v14 = vrot.slane %v2605_v12, 2  ;;  %v2638_v15 = vsel %vm2637_vm11, %v2617_v13, %v2636_v20 }
 0x3d3   : > { %v2607_v18 = vadd.f32 %v2606_v14, %v2605_v12 }
 0x3d5   : > { %v2608_v21 = vrot.slane %v2607_v18, 1 }
 0x3d7   : > { %v2609_v0 = vadd.f32 %v2608_v21, %v2607_v18 }
 0x3d9   : > { %v2618_v25 = vmul.f32 0.0625, %v2609_v0 }
 0x3db   : > { %v2640_v57 = vsel %vm2639_vm12, %v2618_v25, %v2638_v15 }
 0x3dc   : > { %2642 = vst [vmem:[%s341_s12] sm:$0xff] %v2640_v57 }
 0x3dd   : > { %3466 = shalt.err (!%p3463_p4)
}
 0x3de   : > { %s3467_s21 = scalar_lea.hbm %s4274_s13, 128  ;;  %s3471_s14 = scalar_lea.hbm %s4325_s7, 256 }
 0x3df   : > { %p3468_p9 = scmp.ne.s32.totalorder %s4274_s13, %s3467_s21  ;;  %p3472_p8 = scmp.lt.u32.totalorder %s4274_s13, %s4325_s7 }
 0x3e0   : > { %p3473_p13 = scmp.lt.u32.totalorder %s3471_s14, %s3467_s21  ;;  %p3475_p10 = scmp.lt.u32.totalorder %s3467_s21, %s4274_s13 }
 0x3e1   : > { %p3469_p0 = pnand %p3468_p9, %p3733_p5 }
 0x3e2   : > { %p3474_p6 = por %p3473_p13, %p3472_p8 }
 0x3e3   : > { %p3470_p11 = pneg %p3469_p0 }
 0x3e4   : > { %p3476_p3 = por %p3475_p10, %p3474_p6 }
 0x3e6   : > { %p3477_p7 = pnand %p3476_p3, %p3470_p11 }
 0x3e8   : > { %3480 = shalt.err (!%p3477_p7)
}
 0x3e9   : > { %3271 = dma.vmem_to_hbm [thread:$0]  (%p3733_p5), %s4276_s8, 128, %s4274_s13, %s2644_s20  }
 0x3ea PF: > { %s4345_s12 = sld [smem:[#allocation18_spill]]  ;;  %s2669_s17 = sand.u32 1, %s3515_s24  }
 0x3eb   : > { %p4347_p1 = scmp.ge.s32.totalorder %s3527_s27, 2  ;;  %s2670_s16 = scalar_lea.sflag [#allocation7], %s2669_s17 }
 0x3f0   : > { %p4346_p12 = scmp.ne.s32.totalorder %s4345_s12, 0 }
 0x3f2   : > { %p3288_p2 = pnand %p4347_p1, %p4346_p12 }
 0x3f4   : > { %3510 = dma.done.wait (!%p3288_p2), %s2670_s16, 128  }
 0x3f5   : > { %3512 = vsyncadd (!%p3288_p2), %s2670_s16, 4294967168  ;;  %p22_p4 = scmp.ge.s32.totalorder %s3719_s22, 4   ;;  %s4348_s24 = smov %s3519_s25 }
 0x3f6   : > { %s4349_s25 = smov %s3523_s26  ;;  %s4350_s26 = smov %s3729_s18 }
 0x3f7   : > { %s4351_s27 = smov %s3719_s22  ;;  %24 = sbr.rel (!%p22_p4) target bundleno = 7 (0x7), region = 105 }
 0x3fe   :  { %2675 = vsyncpa [#allocation6], 1 }
 0x3ff   :  { %2677 = vsyncpa [#allocation6 + $0x1], 1 }
 0x400   :  { %2678 = vsyncpa [#allocation9], 1 }
 0x401   :  { %2679 = vsyncpa [#allocation12], 1 }
 0x402   :  { %2680 = vsyncpa [#allocation7], 1 }
 0x403   :  { %2682 = vsyncpa [#allocation7 + $0x1], 1 }

</bundles_post_ra>
